<compile_context>
chip_gen: v7x
topology: tpu7x:2x2x1
jax: 0.10.0
libtpu: 0.0.40
codegen_flags: <defaults>
</compile_context>

<pallas_src>
import functools
import math

import jax
import jax.numpy as jnp
from jax import lax
from jax.experimental import pallas as pl
from jax.experimental.pallas import tpu as pltpu


def _round_up(x, m):
    return (x + m - 1) // m * m


def _nbytes(shape, dtype):
    n = 1
    for s in shape:
        n *= int(s)
    return n * jnp.dtype(dtype).itemsize


# ---------------------------------------------------------------------------
# Kernel 1 (stage 1): one pass over resid_pre producing
#   - per-head Q/K/V (edge mask -> ln1 -> fused QKV projection), bf16
#   - residual passthrough + MLP branch (edge mask -> ln2 -> MLP) written
#     directly into the final output buffer.
# ---------------------------------------------------------------------------
def _fused_pre_kernel(amask_ref, mmask_ref, resid_ref,
                      ln1w_ref, ln1b_ref, wqkv_ref, bqkv_ref,
                      ln2w_ref, ln2b_ref, win_ref, bin_ref, wout_ref, bout_ref,
                      q_ref, k_ref, v_ref, fin_ref,
                      *, eps, n_heads, d_head, n_nodes, d_model):
    N, H, D, Dh = n_nodes, n_heads, d_model, d_head
    r = resid_ref[...]                                       # [t1, N*D] f32

    # 0) residual passthrough into node slots [0, N) of the final buffer.
    fin_ref[:, :N * D] = r
    # Lanes [N*D, (N+H)*D) (attention node slots) are intentionally left
    # untouched; the flash-attention kernel overwrites them in place via
    # input_output_aliases before anyone reads them.

    def masked_ln(mask_at, w, b):
        # sum_n resid[:, n, :] * mask[n]  with 128-aligned lane slices
        x = r[:, 0:D] * mask_at(0)
        for n in range(1, N):
            x = x + r[:, n * D:(n + 1) * D] * mask_at(n)
        mu = jnp.mean(x, axis=-1, keepdims=True)
        xc = x - mu
        var = jnp.mean(xc * xc, axis=-1, keepdims=True)
        return xc * lax.rsqrt(var + eps) * w + b

    # 1) attention branch: per-head edge mask -> ln1 -> fused QKV projection.
    w1 = ln1w_ref[...]
    b1 = ln1b_ref[...]
    for h in range(H):
        y = masked_ln(lambda n, h=h: amask_ref[n, h], w1, b1)     # [t1, D] f32
        # fused [D, 3*Dh] projection; 1/sqrt(d_head) already folded into the
        # Q third of wqkv/bqkv by the wrapper.
        qkv = jnp.dot(y.astype(jnp.bfloat16), wqkv_ref[h],
                      preferred_element_type=jnp.float32) + bqkv_ref[h]
        q_ref[h] = qkv[:, :Dh].astype(q_ref.dtype)
        k_ref[h] = qkv[:, Dh:2 * Dh].astype(k_ref.dtype)
        v_ref[h] = qkv[:, 2 * Dh:].astype(v_ref.dtype)

    # 2) mlp branch: edge mask -> ln2 -> MLP (gelu_new) -> last node slot.
    ym = masked_ln(lambda n: mmask_ref[n], ln2w_ref[...], ln2b_ref[...])
    pre = jnp.dot(ym.astype(jnp.bfloat16), win_ref[...],
                  preferred_element_type=jnp.float32) + bin_ref[...]
    c = math.sqrt(2.0 / math.pi)
    post = 0.5 * pre * (1.0 + jnp.tanh(c * (pre + 0.044715 * pre * pre * pre)))
    out = jnp.dot(post.astype(jnp.bfloat16), wout_ref[...],
                  preferred_element_type=jnp.float32) + bout_ref[...]
    fin_ref[:, (N + H) * D:] = out.astype(fin_ref.dtype)


# ---------------------------------------------------------------------------
# Kernel 2 (stage 2): flash-style causal attention over pre-projected Q/K/V,
# writing each head's output in place into the final residual buffer.
# ---------------------------------------------------------------------------
def _flash_attn_kernel(q_ref, k_ref, v_ref, wo_ref, bo_ref, fin_hbm_ref, o_ref,
                       m_sc, l_sc, acc_sc):
    del fin_hbm_ref                    # aliased output; never touched here
    qi = pl.program_id(2)
    ki = pl.program_id(3)
    nk = pl.num_programs(3)

    @pl.when(ki == 0)
    def _init():
        m_sc[...] = jnp.full_like(m_sc, -jnp.inf)
        l_sc[...] = jnp.zeros_like(l_sc)
        acc_sc[...] = jnp.zeros_like(acc_sc)

    def step(masked):
        # scores: [tq, tk] f32 (contraction over d_head)
        s = lax.dot_general(q_ref[...], k_ref[...], (((1,), (1,)), ((), ())),
                            preferred_element_type=jnp.float32)
        if masked:
            # only the diagonal block needs the causal mask (ki == qi, tq==tk)
            tq, tk = s.shape
            row = lax.broadcasted_iota(jnp.int32, (tq, tk), 0)
            col = lax.broadcasted_iota(jnp.int32, (tq, tk), 1)
            s = jnp.where(col > row, -jnp.inf, s)
        m_prev = m_sc[...]
        m_new = jnp.maximum(m_prev, jnp.max(s, axis=-1, keepdims=True))
        alpha = jnp.exp(m_prev - m_new)
        p = jnp.exp(s - m_new)
        l_sc[...] = alpha * l_sc[...] + jnp.sum(p, axis=-1, keepdims=True)
        acc_sc[...] = alpha * acc_sc[...] + jnp.dot(
            p.astype(jnp.bfloat16), v_ref[...],
            preferred_element_type=jnp.float32)
        m_sc[...] = m_new

    # off-diagonal (fully visible) blocks: no mask math at all
    @pl.when(ki < qi)
    def _off_diag():
        step(masked=False)

    # diagonal block: causal mask applied
    @pl.when(ki == qi)
    def _diag():
        step(masked=True)

    @pl.when(ki == nk - 1)
    def _finalize():
        # Causal gating keeps the diagonal, so every row has l > 0; the torch
        # NaN->0 guard is dead code and dropped.
        z = (acc_sc[...] * pl.reciprocal(l_sc[...], approx=True)
             ).astype(jnp.bfloat16)
        out = jnp.dot(z, wo_ref[...], preferred_element_type=jnp.float32)
        o_ref[...] = (out + bo_ref[...]).astype(o_ref.dtype)   # bo = b_O / H


# ---------------------------------------------------------------------------
# Wrapper: full TransformerBlock forward
# ---------------------------------------------------------------------------
def transformer_block_forward(resid_pre, edge_mask_attn, edge_mask_mlp,
                              ln1_w, ln1_b,
                              W_Q, b_Q, W_K, b_K, W_V, b_V, W_O, b_O,
                              ln2_w, ln2_b,
                              W_in, b_in, W_out, b_out,
                              *, eps=1e-5, seq_tile_ln=256, seq_tile_attn=128):
    """resid_pre: [B, S, prev_nodes, d_model] -> [B, S, prev_nodes+H+1, d_model]."""
    B, S, N, D = resid_pre.shape
    H, _, Dh = W_Q.shape
    Dm = W_in.shape[-1]
    Nout = N + H + 1
    f32, bf16 = jnp.float32, jnp.bfloat16

    # sequence tiling: stage-1 tile (t1) is forced to a multiple of the
    # attention tile (ta) so a single padded length serves both kernels.
    base = _round_up(S, 8)
    ta = min(seq_tile_attn, base)
    t1 = min(seq_tile_ln, base)
    t1 = max(ta, (t1 // ta) * ta)
    S_pad = _round_up(S, t1)
    n_s1, n_sa = S_pad // t1, S_pad // ta

    resid_flat = resid_pre.reshape(B, S, N * D).astype(f32)
    if S_pad != S:
        resid_flat = jnp.pad(resid_flat, ((0, 0), (0, S_pad - S), (0, 0)))

    # --- weight prep (hoist outside the per-step jit if invoked repeatedly) --
    scale = 1.0 / math.sqrt(Dh)
    wqkv = jnp.concatenate([W_Q * scale, W_K, W_V], axis=-1).astype(bf16)   # [H,D,3Dh]
    bqkv = jnp.concatenate([b_Q * scale, b_K, b_V],
                           axis=-1).reshape(H, 1, 3 * Dh).astype(f32)
    wo = W_O.astype(bf16)                                                   # [H,Dh,D]
    bo = (b_O / H).reshape(1, D).astype(f32)
    amask = edge_mask_attn.astype(f32)          # [N, H] -> SMEM scalars
    mmask = edge_mask_mlp.astype(f32)           # [N]    -> SMEM scalars

    # ------------------ stage 1: fused mask/LN/QKV + MLP -------------------
    stage1_vmem = 2 * (_nbytes((t1, N * D), f32)
                       + 4 * _nbytes((1, D), f32)
                       + _nbytes((H, D, 3 * Dh), bf16)
                       + _nbytes((H, 1, 3 * Dh), f32)
                       + _nbytes((D, Dm), bf16) + _nbytes((1, Dm), f32)
                       + _nbytes((Dm, D), bf16) + _nbytes((1, D), f32)
                       + 3 * _nbytes((H, t1, Dh), bf16)
                       + _nbytes((t1, Nout * D), f32)) + (16 << 20)

    q, k, v, fin = pl.pallas_call(
        functools.partial(_fused_pre_kernel, eps=eps, n_heads=H, d_head=Dh,
                          n_nodes=N, d_model=D),
        grid_spec=pltpu.PrefetchScalarGridSpec(
            num_scalar_prefetch=0,
            grid=(n_s1, B),
            in_specs=[
                pl.BlockSpec(memory_space=pltpu.MemorySpace.SMEM),   # amask
                pl.BlockSpec(memory_space=pltpu.MemorySpace.SMEM),   # mmask
                pl.BlockSpec((None, t1, N * D), lambda si, b: (b, si, 0)),
                pl.BlockSpec((1, D), lambda si, b: (0, 0)),          # ln1 w
                pl.BlockSpec((1, D), lambda si, b: (0, 0)),          # ln1 b
                pl.BlockSpec((H, D, 3 * Dh), lambda si, b: (0, 0, 0)),
                pl.BlockSpec((H, 1, 3 * Dh), lambda si, b: (0, 0, 0)),
                pl.BlockSpec((1, D), lambda si, b: (0, 0)),          # ln2 w
                pl.BlockSpec((1, D), lambda si, b: (0, 0)),          # ln2 b
                pl.BlockSpec((D, Dm), lambda si, b: (0, 0)),         # W_in
                pl.BlockSpec((1, Dm), lambda si, b: (0, 0)),         # b_in
                pl.BlockSpec((Dm, D), lambda si, b: (0, 0)),         # W_out
                pl.BlockSpec((1, D), lambda si, b: (0, 0)),          # b_out
            ],
            out_specs=[
                pl.BlockSpec((None, H, t1, Dh), lambda si, b: (b, 0, si, 0)),
                pl.BlockSpec((None, H, t1, Dh), lambda si, b: (b, 0, si, 0)),
                pl.BlockSpec((None, H, t1, Dh), lambda si, b: (b, 0, si, 0)),
                pl.BlockSpec((None, t1, Nout * D), lambda si, b: (b, si, 0)),
            ],
        ),
        out_shape=(jax.ShapeDtypeStruct((B, H, S_pad, Dh), bf16),
                   jax.ShapeDtypeStruct((B, H, S_pad, Dh), bf16),
                   jax.ShapeDtypeStruct((B, H, S_pad, Dh), bf16),
                   jax.ShapeDtypeStruct((B, S_pad, Nout * D), f32)),
        compiler_params=pltpu.CompilerParams(
            dimension_semantics=("parallel", "parallel"),
            vmem_limit_bytes=int(stage1_vmem)),
    )(amask, mmask, resid_flat,
      ln1_w.reshape(1, D).astype(f32), ln1_b.reshape(1, D).astype(f32),
      wqkv, bqkv,
      ln2_w.reshape(1, D).astype(f32), ln2_b.reshape(1, D).astype(f32),
      W_in.astype(bf16), b_in.reshape(1, Dm).astype(f32),
      W_out.astype(bf16), b_out.reshape(1, D).astype(f32))

    # ------------------ stage 2: flash attention (in place) ----------------
    stage2_vmem = 2 * (3 * _nbytes((ta, Dh), bf16)
                       + _nbytes((Dh, D), bf16) + _nbytes((1, D), f32)
                       + _nbytes((ta, D), f32)) \
        + 2 * _nbytes((ta, 1), f32) + _nbytes((ta, Dh), f32) + (16 << 20)

    cost = pl.CostEstimate(
        flops=int(2 * B * H * (S_pad * S_pad * Dh       # Q.K^T (upper bound)
                               + S_pad * S_pad * Dh     # P.V
                               + S_pad * Dh * D)),      # Z.W_O
        transcendentals=int(B * H * S_pad * S_pad),
        bytes_accessed=int(3 * B * H * S_pad * Dh * 2 + H * Dh * D * 2
                           + B * S_pad * H * D * 4),
    )

    fin = pl.pallas_call(
        _flash_attn_kernel,
        grid_spec=pltpu.PrefetchScalarGridSpec(
            num_scalar_prefetch=0,
            # head outermost; causally-skipped key blocks map back to the
            # resident block (no DMA) via the clamped index_map.
            grid=(H, B, n_sa, n_sa),
            in_specs=[
                pl.BlockSpec((None, None, ta, Dh),
                             lambda h, b, qi, ki: (b, h, qi, 0)),
                pl.BlockSpec((None, None, ta, Dh),
                             lambda h, b, qi, ki: (b, h, jnp.minimum(ki, qi), 0)),
                pl.BlockSpec((None, None, ta, Dh),
                             lambda h, b, qi, ki: (b, h, jnp.minimum(ki, qi), 0)),
                pl.BlockSpec((None, Dh, D), lambda h, b, qi, ki: (h, 0, 0)),
                pl.BlockSpec((1, D), lambda h, b, qi, ki: (0, 0)),
                pl.BlockSpec(memory_space=pl.ANY),    # aliased final buffer
            ],
            # lane-dense write into node slot (N + h) of the final buffer
            out_specs=pl.BlockSpec((None, ta, D),
                                   lambda h, b, qi, ki: (b, qi, N + h)),
            scratch_shapes=[
                pltpu.VMEM((ta, 1), f32),     # running max
                pltpu.VMEM((ta, 1), f32),     # running denominator
                pltpu.VMEM((ta, Dh), f32),    # running numerator
            ],
        ),
        out_shape=jax.ShapeDtypeStruct((B, S_pad, Nout * D), f32),
        input_output_aliases={5: 0},
        cost_estimate=cost,
        compiler_params=pltpu.CompilerParams(
            dimension_semantics=("parallel", "parallel", "parallel", "arbitrary"),
            vmem_limit_bytes=int(stage2_vmem)),
    )(q, k, v, wo, bo, fin)

    out = fin.reshape(B, S_pad, Nout, D)
    if S_pad != S:
        out = out[:, :S]
    return out


# ---------------------------------------------------------------------------
# Pure-JAX reference mirroring the PyTorch forward exactly (f32)
# ---------------------------------------------------------------------------
def transformer_block_reference(resid_pre, edge_mask_attn, edge_mask_mlp,
                                ln1_w, ln1_b,
                                W_Q, b_Q, W_K, b_K, W_V, b_V, W_O, b_O,
                                ln2_w, ln2_b,
                                W_in, b_in, W_out, b_out, *, eps=1e-5):
    B, S, N, D = resid_pre.shape
    H, _, Dh = W_Q.shape

    def ln(x, w, b):
        mu = jnp.mean(x, axis=-1, keepdims=True)
        xc = x - mu
        sc = jnp.sqrt(jnp.mean(xc * xc, axis=-1, keepdims=True) + eps)
        return xc / sc * w + b

    masked = jnp.einsum('bpnd,nh->bphd', resid_pre, edge_mask_attn)
    xn = ln(masked, ln1_w, ln1_b)
    q = jnp.einsum('bqhd,hde->bqhe', xn, W_Q) + b_Q
    k = jnp.einsum('bkhd,hde->bkhe', xn, W_K) + b_K
    v = jnp.einsum('bkhd,hde->bkhe', xn, W_V) + b_V
    scores = jnp.einsum('bqhe,bkhe->bhqk', q, k) / math.sqrt(Dh)
    causal = jnp.triu(jnp.ones((S, S), dtype=bool), k=1)
    scores = jnp.where(causal[None, None], -jnp.inf, scores)
    pattern = jax.nn.softmax(scores, axis=-1)
    pattern = jnp.where(jnp.isnan(pattern), 0.0, pattern)
    z = jnp.einsum('bhqk,bkhe->bqhe', pattern, v)
    attn_out = jnp.einsum('bqhe,hed->bqhd', z, W_O) + b_O / H
    residual = jnp.concatenate([resid_pre, attn_out], axis=2)

    mlp_in = jnp.einsum('bpnd,n->bpd', resid_pre, edge_mask_mlp)
    xm = ln(mlp_in, ln2_w, ln2_b)
    pre = xm @ W_in + b_in
    c = math.sqrt(2.0 / math.pi)
    post = 0.5 * pre * (1.0 + jnp.tanh(c * (pre + 0.044715 * pre ** 3)))
    mlp_out = post @ W_out + b_out
    return jnp.concatenate([residual, mlp_out[:, :, None, :]], axis=2)


if __name__ == "__main__":
    # small shapes consistent with the module:
    # d_model=128, d_head=32, n_heads=4, d_mlp=256, prev_layers=1 -> prev_nodes=6
    B, S, H, D, Dh, Dm = 2, 8, 4, 128, 32, 256
    prev_layers = 1
    N = (H + 1) * prev_layers + 1
    eps = 1e-5
    init_range = 0.02
    f32 = jnp.float32

    key = jax.random.PRNGKey(0)
    ks = jax.random.split(key, 20)
    resid_pre = jax.random.normal(ks[0], (B, S, N, D), f32)
    edge_mask_attn = jax.random.uniform(ks[1], (N, H), dtype=f32)
    edge_mask_mlp = jax.random.uniform(ks[2], (N,), dtype=f32)
    ln1_w = 1.0 + 0.1 * jax.random.normal(ks[3], (D,), f32)
    ln1_b = 0.1 * jax.random.normal(ks[4], (D,), f32)
    ln2_w = 1.0 + 0.1 * jax.random.normal(ks[5], (D,), f32)
    ln2_b = 0.1 * jax.random.normal(ks[6], (D,), f32)
    W_Q = init_range * jax.random.normal(ks[7], (H, D, Dh), f32)
    b_Q = 0.01 * jax.random.normal(ks[8], (H, Dh), f32)
    W_K = init_range * jax.random.normal(ks[9], (H, D, Dh), f32)
    b_K = 0.01 * jax.random.normal(ks[10], (H, Dh), f32)
    W_V = init_range * jax.random.normal(ks[11], (H, D, Dh), f32)
    b_V = 0.01 * jax.random.normal(ks[12], (H, Dh), f32)
    W_O = init_range * jax.random.normal(ks[13], (H, Dh, D), f32)
    b_O = 0.01 * jax.random.normal(ks[14], (D,), f32)
    W_in = init_range * jax.random.normal(ks[15], (D, Dm), f32)
    b_in = 0.01 * jax.random.normal(ks[16], (Dm,), f32)
    W_out = init_range * jax.random.normal(ks[17], (Dm, D), f32)
    b_out = 0.01 * jax.random.normal(ks[18], (D,), f32)

    fwd = jax.jit(functools.partial(transformer_block_forward, eps=eps))
    out = fwd(resid_pre, edge_mask_attn, edge_mask_mlp, ln1_w, ln1_b,
              W_Q, b_Q, W_K, b_K, W_V, b_V, W_O, b_O,
              ln2_w, ln2_b, W_in, b_in, W_out, b_out)
    out = jax.block_until_ready(out)

    ref = transformer_block_reference(
        resid_pre, edge_mask_attn, edge_mask_mlp, ln1_w, ln1_b,
        W_Q, b_Q, W_K, b_K, W_V, b_V, W_O, b_O,
        ln2_w, ln2_b, W_in, b_in, W_out, b_out, eps=eps)

    assert out.shape == (B, S, N + H + 1, D), out.shape
    max_err = jnp.max(jnp.abs(out - ref))
    # bf16 matmuls + approx reciprocal => relaxed tolerance vs the f32 reference
    assert jnp.allclose(out, ref, atol=2e-2, rtol=2e-2), f"max abs err {max_err}"

    print("KERNEL_OK")
</pallas_src>

<mosaic_0001>
module attributes {stable_mosaic.version = 11 : i64} {
  func.func @_flash_attn_kernel(%arg0: i32, %arg1: i32, %arg2: i32, %arg3: i32, %arg4: memref<1x1x8x32xbf16, #tpu.memory_space<vmem>>, %arg5: memref<1x1x8x32xbf16, #tpu.memory_space<vmem>>, %arg6: memref<1x1x8x32xbf16, #tpu.memory_space<vmem>>, %arg7: memref<1x32x128xbf16, #tpu.memory_space<vmem>>, %arg8: memref<1x128xf32, #tpu.memory_space<vmem>>, %arg9: memref<2x8x1408xf32, #tpu.memory_space<any>>, %arg10: memref<1x8x128xf32, #tpu.memory_space<vmem>>, %arg11: memref<8x1xf32, #tpu.memory_space<vmem>>, %arg12: memref<8x1xf32, #tpu.memory_space<vmem>>, %arg13: memref<8x32xf32, #tpu.memory_space<vmem>>) attributes {dimension_semantics = [#tpu.dimension_semantics<parallel>, #tpu.dimension_semantics<parallel>, #tpu.dimension_semantics<parallel>, #tpu.dimension_semantics<arbitrary>], iteration_bounds = array<i64: 4, 2, 1, 1>, scalar_prefetch = 0 : i64, scratch_operands = 3 : i64, tpu.core_type = #tpu.core_type<tc>, window_params = [{transform_indices = @transform_0, window_bounds = array<i64: 1, 1, 8, 32>}, {transform_indices = @transform_1, window_bounds = array<i64: 1, 1, 8, 32>}, {transform_indices = @transform_2, window_bounds = array<i64: 1, 1, 8, 32>}, {transform_indices = @transform_3, window_bounds = array<i64: 1, 32, 128>}, {pipeline_mode = #tpu.pipeline_mode<synchronous>, transform_indices = @transform_4, window_bounds = array<i64: 1, 128>}, {}, {transform_indices = @transform_6, window_bounds = array<i64: 1, 8, 128>}]} {
    %c0_i32 = arith.constant 0 : i32
    %0 = arith.cmpi eq, %arg3, %c0_i32 : i32
    %1 = arith.extui %0 : i1 to i32
    %c0_i32_0 = arith.constant 0 : i32
    %2 = arith.cmpi ne, %1, %c0_i32_0 : i32
    scf.if %2 {
      %cst = arith.constant 0xFF800000 : f32
      %12 = vector.broadcast %cst : f32 to vector<8x1xf32>
      %c0 = arith.constant 0 : index
      %c0_5 = arith.constant 0 : index
      %13 = vector.load %arg11[%c0, %c0_5] : memref<8x1xf32, #tpu.memory_space<vmem>>, vector<8x1xf32>
      tpu.vector_store %arg11[%c0, %c0_5], %12 {strides = array<i32>} : memref<8x1xf32, #tpu.memory_space<vmem>>, vector<8x1xf32>,
      %cst_6 = arith.constant 0.000000e+00 : f32
      %14 = vector.broadcast %cst_6 : f32 to vector<8x1xf32>
      %c0_7 = arith.constant 0 : index
      %c0_8 = arith.constant 0 : index
      %15 = vector.load %arg12[%c0_7, %c0_8] : memref<8x1xf32, #tpu.memory_space<vmem>>, vector<8x1xf32>
      tpu.vector_store %arg12[%c0_7, %c0_8], %14 {strides = array<i32>} : memref<8x1xf32, #tpu.memory_space<vmem>>, vector<8x1xf32>,
      %cst_9 = arith.constant 0.000000e+00 : f32
      %16 = vector.broadcast %cst_9 : f32 to vector<8x32xf32>
      %c0_10 = arith.constant 0 : index
      %c0_11 = arith.constant 0 : index
      %17 = vector.load %arg13[%c0_10, %c0_11] : memref<8x32xf32, #tpu.memory_space<vmem>>, vector<8x32xf32>
      tpu.vector_store %arg13[%c0_10, %c0_11], %16 {strides = array<i32>} : memref<8x32xf32, #tpu.memory_space<vmem>>, vector<8x32xf32>,
    } else {
    }
    %3 = arith.cmpi slt, %arg3, %arg2 : i32
    %4 = arith.extui %3 : i1 to i32
    %c0_i32_1 = arith.constant 0 : i32
    %5 = arith.cmpi ne, %4, %c0_i32_1 : i32
    scf.if %5 {
      %c0 = arith.constant 0 : index
      %c0_5 = arith.constant 0 : index
      %c0_6 = arith.constant 0 : index
      %c0_7 = arith.constant 0 : index
      %12 = vector.load %arg4[%c0, %c0_5, %c0_6, %c0_7] : memref<1x1x8x32xbf16, #tpu.memory_space<vmem>>, vector<1x1x8x32xbf16>
      %13 = vector.shape_cast %12 : vector<1x1x8x32xbf16> to vector<8x32xbf16>
      %c0_8 = arith.constant 0 : index
      %c0_9 = arith.constant 0 : index
      %c0_10 = arith.constant 0 : index
      %c0_11 = arith.constant 0 : index
      %14 = vector.load %arg5[%c0_8, %c0_9, %c0_10, %c0_11] : memref<1x1x8x32xbf16, #tpu.memory_space<vmem>>, vector<1x1x8x32xbf16>
      %15 = vector.shape_cast %14 : vector<1x1x8x32xbf16> to vector<8x32xbf16>
      %cst = arith.constant dense<0.000000e+00> : vector<8x8xf32>
      %16 = tpu.matmul %13, %15, %cst {dimension_numbers = #tpu.dot_dimension_numbers<[1], [1], [0], [0], [0, 0, 1, 0], [], []>} : vector<8x32xbf16>, vector<8x32xbf16>, vector<8x8xf32> -> vector<8x8xf32>
      %c0_12 = arith.constant 0 : index
      %c0_13 = arith.constant 0 : index
      %17 = vector.load %arg11[%c0_12, %c0_13] : memref<8x1xf32, #tpu.memory_space<vmem>>, vector<8x1xf32>
      %cst_14 = arith.constant dense<0xFF800000> : vector<8xf32>
      %18 = vector.multi_reduction <maximumf>, %16, %cst_14 [1] : vector<8x8xf32> to vector<8xf32>
      %19 = vector.shape_cast %18 : vector<8xf32> to vector<8x1xf32>
      %20 = arith.maximumf %17, %19 : vector<8x1xf32>
      %21 = arith.subf %17, %20 : vector<8x1xf32>
      %22 = math.exp %21 : vector<8x1xf32>
      %23 = vector.broadcast %20 : vector<8x1xf32> to vector<8x8xf32>
      %24 = arith.subf %16, %23 : vector<8x8xf32>
      %25 = math.exp %24 : vector<8x8xf32>
      %c0_15 = arith.constant 0 : index
      %c0_16 = arith.constant 0 : index
      %26 = vector.load %arg12[%c0_15, %c0_16] : memref<8x1xf32, #tpu.memory_space<vmem>>, vector<8x1xf32>
      %27 = arith.mulf %22, %26 : vector<8x1xf32>
      %cst_17 = arith.constant dense<0.000000e+00> : vector<8xf32>
      %28 = vector.multi_reduction <add>, %25, %cst_17 [1] : vector<8x8xf32> to vector<8xf32>
      %29 = vector.shape_cast %28 : vector<8xf32> to vector<8x1xf32>
      %30 = arith.addf %27, %29 : vector<8x1xf32>
      %c0_18 = arith.constant 0 : index
      %c0_19 = arith.constant 0 : index
      %31 = vector.load %arg12[%c0_18, %c0_19] : memref<8x1xf32, #tpu.memory_space<vmem>>, vector<8x1xf32>
      tpu.vector_store %arg12[%c0_18, %c0_19], %30 {strides = array<i32>} : memref<8x1xf32, #tpu.memory_space<vmem>>, vector<8x1xf32>,
      %c0_20 = arith.constant 0 : index
      %c0_21 = arith.constant 0 : index
      %32 = vector.load %arg13[%c0_20, %c0_21] : memref<8x32xf32, #tpu.memory_space<vmem>>, vector<8x32xf32>
      %33 = vector.broadcast %22 : vector<8x1xf32> to vector<8x32xf32>
      %34 = arith.mulf %33, %32 : vector<8x32xf32>
      %35 = arith.truncf %25 : vector<8x8xf32> to vector<8x8xbf16>
      %c0_22 = arith.constant 0 : index
      %c0_23 = arith.constant 0 : index
      %c0_24 = arith.constant 0 : index
      %c0_25 = arith.constant 0 : index
      %36 = vector.load %arg6[%c0_22, %c0_23, %c0_24, %c0_25] : memref<1x1x8x32xbf16, #tpu.memory_space<vmem>>, vector<1x1x8x32xbf16>
      %37 = vector.shape_cast %36 : vector<1x1x8x32xbf16> to vector<8x32xbf16>
      %cst_26 = arith.constant dense<0.000000e+00> : vector<8x32xf32>
      %38 = tpu.matmul %35, %37, %cst_26 {dimension_numbers = #tpu.dot_dimension_numbers<[1], [0], [0], [1], [0, 0, 1, 1], [], []>} : vector<8x8xbf16>, vector<8x32xbf16>, vector<8x32xf32> -> vector<8x32xf32>
      %39 = arith.addf %34, %38 : vector<8x32xf32>
      %c0_27 = arith.constant 0 : index
      %c0_28 = arith.constant 0 : index
      %40 = vector.load %arg13[%c0_27, %c0_28] : memref<8x32xf32, #tpu.memory_space<vmem>>, vector<8x32xf32>
      tpu.vector_store %arg13[%c0_27, %c0_28], %39 {strides = array<i32>} : memref<8x32xf32, #tpu.memory_space<vmem>>, vector<8x32xf32>,
      %c0_29 = arith.constant 0 : index
      %c0_30 = arith.constant 0 : index
      %41 = vector.load %arg11[%c0_29, %c0_30] : memref<8x1xf32, #tpu.memory_space<vmem>>, vector<8x1xf32>
      tpu.vector_store %arg11[%c0_29, %c0_30], %20 {strides = array<i32>} : memref<8x1xf32, #tpu.memory_space<vmem>>, vector<8x1xf32>,
    } else {
    }
    %6 = arith.cmpi eq, %arg3, %arg2 : i32
    %7 = arith.extui %6 : i1 to i32
    %c0_i32_2 = arith.constant 0 : i32
    %8 = arith.cmpi ne, %7, %c0_i32_2 : i32
    scf.if %8 {
      %c0 = arith.constant 0 : index
      %c0_5 = arith.constant 0 : index
      %c0_6 = arith.constant 0 : index
      %c0_7 = arith.constant 0 : index
      %12 = vector.load %arg4[%c0, %c0_5, %c0_6, %c0_7] : memref<1x1x8x32xbf16, #tpu.memory_space<vmem>>, vector<1x1x8x32xbf16>
      %13 = vector.shape_cast %12 : vector<1x1x8x32xbf16> to vector<8x32xbf16>
      %c0_8 = arith.constant 0 : index
      %c0_9 = arith.constant 0 : index
      %c0_10 = arith.constant 0 : index
      %c0_11 = arith.constant 0 : index
      %14 = vector.load %arg5[%c0_8, %c0_9, %c0_10, %c0_11] : memref<1x1x8x32xbf16, #tpu.memory_space<vmem>>, vector<1x1x8x32xbf16>
      %15 = vector.shape_cast %14 : vector<1x1x8x32xbf16> to vector<8x32xbf16>
      %cst = arith.constant dense<0.000000e+00> : vector<8x8xf32>
      %16 = tpu.matmul %13, %15, %cst {dimension_numbers = #tpu.dot_dimension_numbers<[1], [1], [0], [0], [0, 0, 1, 0], [], []>} : vector<8x32xbf16>, vector<8x32xbf16>, vector<8x8xf32> -> vector<8x8xf32>
      %17 = tpu.iota {dimensions = array<i32: 0>} : vector<8x8xi32>
      %18 = tpu.iota {dimensions = array<i32: 1>} : vector<8x8xi32>
      %19 = arith.cmpi sgt, %18, %17 : vector<8x8xi32>
      %cst_12 = arith.constant 0xFF800000 : f32
      %20 = vector.broadcast %cst_12 : f32 to vector<8x8xf32>
      %21 = arith.select %19, %20, %16 : vector<8x8xi1>, vector<8x8xf32>
      %c0_13 = arith.constant 0 : index
      %c0_14 = arith.constant 0 : index
      %22 = vector.load %arg11[%c0_13, %c0_14] : memref<8x1xf32, #tpu.memory_space<vmem>>, vector<8x1xf32>
      %cst_15 = arith.constant dense<0xFF800000> : vector<8xf32>
      %23 = vector.multi_reduction <maximumf>, %21, %cst_15 [1] : vector<8x8xf32> to vector<8xf32>
      %24 = vector.shape_cast %23 : vector<8xf32> to vector<8x1xf32>
      %25 = arith.maximumf %22, %24 : vector<8x1xf32>
      %26 = arith.subf %22, %25 : vector<8x1xf32>
      %27 = math.exp %26 : vector<8x1xf32>
      %28 = vector.broadcast %25 : vector<8x1xf32> to vector<8x8xf32>
      %29 = arith.subf %21, %28 : vector<8x8xf32>
      %30 = math.exp %29 : vector<8x8xf32>
      %c0_16 = arith.constant 0 : index
      %c0_17 = arith.constant 0 : index
      %31 = vector.load %arg12[%c0_16, %c0_17] : memref<8x1xf32, #tpu.memory_space<vmem>>, vector<8x1xf32>
      %32 = arith.mulf %27, %31 : vector<8x1xf32>
      %cst_18 = arith.constant dense<0.000000e+00> : vector<8xf32>
      %33 = vector.multi_reduction <add>, %30, %cst_18 [1] : vector<8x8xf32> to vector<8xf32>
      %34 = vector.shape_cast %33 : vector<8xf32> to vector<8x1xf32>
      %35 = arith.addf %32, %34 : vector<8x1xf32>
      %c0_19 = arith.constant 0 : index
      %c0_20 = arith.constant 0 : index
      %36 = vector.load %arg12[%c0_19, %c0_20] : memref<8x1xf32, #tpu.memory_space<vmem>>, vector<8x1xf32>
      tpu.vector_store %arg12[%c0_19, %c0_20], %35 {strides = array<i32>} : memref<8x1xf32, #tpu.memory_space<vmem>>, vector<8x1xf32>,
      %c0_21 = arith.constant 0 : index
      %c0_22 = arith.constant 0 : index
      %37 = vector.load %arg13[%c0_21, %c0_22] : memref<8x32xf32, #tpu.memory_space<vmem>>, vector<8x32xf32>
      %38 = vector.broadcast %27 : vector<8x1xf32> to vector<8x32xf32>
      %39 = arith.mulf %38, %37 : vector<8x32xf32>
      %40 = arith.truncf %30 : vector<8x8xf32> to vector<8x8xbf16>
      %c0_23 = arith.constant 0 : index
      %c0_24 = arith.constant 0 : index
      %c0_25 = arith.constant 0 : index
      %c0_26 = arith.constant 0 : index
      %41 = vector.load %arg6[%c0_23, %c0_24, %c0_25, %c0_26] : memref<1x1x8x32xbf16, #tpu.memory_space<vmem>>, vector<1x1x8x32xbf16>
      %42 = vector.shape_cast %41 : vector<1x1x8x32xbf16> to vector<8x32xbf16>
      %cst_27 = arith.constant dense<0.000000e+00> : vector<8x32xf32>
      %43 = tpu.matmul %40, %42, %cst_27 {dimension_numbers = #tpu.dot_dimension_numbers<[1], [0], [0], [1], [0, 0, 1, 1], [], []>} : vector<8x8xbf16>, vector<8x32xbf16>, vector<8x32xf32> -> vector<8x32xf32>
      %44 = arith.addf %39, %43 : vector<8x32xf32>
      %c0_28 = arith.constant 0 : index
      %c0_29 = arith.constant 0 : index
      %45 = vector.load %arg13[%c0_28, %c0_29] : memref<8x32xf32, #tpu.memory_space<vmem>>, vector<8x32xf32>
      tpu.vector_store %arg13[%c0_28, %c0_29], %44 {strides = array<i32>} : memref<8x32xf32, #tpu.memory_space<vmem>>, vector<8x32xf32>,
      %c0_30 = arith.constant 0 : index
      %c0_31 = arith.constant 0 : index
      %46 = vector.load %arg11[%c0_30, %c0_31] : memref<8x1xf32, #tpu.memory_space<vmem>>, vector<8x1xf32>
      tpu.vector_store %arg11[%c0_30, %c0_31], %25 {strides = array<i32>} : memref<8x1xf32, #tpu.memory_space<vmem>>, vector<8x1xf32>,
    } else {
    }
    %c0_i32_3 = arith.constant 0 : i32
    %9 = arith.cmpi eq, %arg3, %c0_i32_3 : i32
    %10 = arith.extui %9 : i1 to i32
    %c0_i32_4 = arith.constant 0 : i32
    %11 = arith.cmpi ne, %10, %c0_i32_4 : i32
    scf.if %11 {
      %c0 = arith.constant 0 : index
      %c0_5 = arith.constant 0 : index
      %12 = vector.load %arg13[%c0, %c0_5] : memref<8x32xf32, #tpu.memory_space<vmem>>, vector<8x32xf32>
      %c0_6 = arith.constant 0 : index
      %c0_7 = arith.constant 0 : index
      %13 = vector.load %arg12[%c0_6, %c0_7] : memref<8x1xf32, #tpu.memory_space<vmem>>, vector<8x1xf32>
      %14 = tpu.reciprocal %13 {approx = true} : vector<8x1xf32> -> vector<8x1xf32>
      %15 = vector.broadcast %14 : vector<8x1xf32> to vector<8x32xf32>
      %16 = arith.mulf %12, %15 : vector<8x32xf32>
      %17 = arith.truncf %16 : vector<8x32xf32> to vector<8x32xbf16>
      %c0_8 = arith.constant 0 : index
      %c0_9 = arith.constant 0 : index
      %c0_10 = arith.constant 0 : index
      %18 = vector.load %arg7[%c0_8, %c0_9, %c0_10] : memref<1x32x128xbf16, #tpu.memory_space<vmem>>, vector<1x32x128xbf16>
      %19 = vector.shape_cast %18 : vector<1x32x128xbf16> to vector<32x128xbf16>
      %cst = arith.constant dense<0.000000e+00> : vector<8x128xf32>
      %20 = tpu.matmul %17, %19, %cst {dimension_numbers = #tpu.dot_dimension_numbers<[1], [0], [0], [1], [0, 0, 1, 1], [], []>} : vector<8x32xbf16>, vector<32x128xbf16>, vector<8x128xf32> -> vector<8x128xf32>
      %c0_11 = arith.constant 0 : index
      %c0_12 = arith.constant 0 : index
      %21 = vector.load %arg8[%c0_11, %c0_12] : memref<1x128xf32, #tpu.memory_space<vmem>>, vector<1x128xf32>
      %22 = vector.broadcast %21 : vector<1x128xf32> to vector<8x128xf32>
      %23 = arith.addf %20, %22 : vector<8x128xf32>
      %c0_13 = arith.constant 0 : index
      %c0_14 = arith.constant 0 : index
      %c0_15 = arith.constant 0 : index
      %24 = vector.load %arg10[%c0_13, %c0_14, %c0_15] : memref<1x8x128xf32, #tpu.memory_space<vmem>>, vector<1x8x128xf32>
      %25 = vector.shape_cast %24 : vector<1x8x128xf32> to vector<8x128xf32>
      %26 = vector.shape_cast %23 : vector<8x128xf32> to vector<1x8x128xf32>
      tpu.vector_store %arg10[%c0_13, %c0_14, %c0_15], %26 {strides = array<i32>} : memref<1x8x128xf32, #tpu.memory_space<vmem>>, vector<1x8x128xf32>,
    } else {
    }
    return
  }
  func.func @transform_0(%arg0: i32, %arg1: i32, %arg2: i32, %arg3: i32) -> (i32, i32, i32, i32) {
    %c0_i32 = arith.constant 0 : i32
    %c0_i32_0 = arith.constant 0 : i32
    return %arg1, %arg0, %arg2, %c0_i32 : i32, i32, i32, i32
  }
  func.func @transform_1(%arg0: i32, %arg1: i32, %arg2: i32, %arg3: i32) -> (i32, i32, i32, i32) {
    %0 = arith.minsi %arg3, %arg2 : i32
    %c0_i32 = arith.constant 0 : i32
    %c0_i32_0 = arith.constant 0 : i32
    return %arg1, %arg0, %0, %c0_i32 : i32, i32, i32, i32
  }
  func.func @transform_2(%arg0: i32, %arg1: i32, %arg2: i32, %arg3: i32) -> (i32, i32, i32, i32) {
    %0 = arith.minsi %arg3, %arg2 : i32
    %c0_i32 = arith.constant 0 : i32
    %c0_i32_0 = arith.constant 0 : i32
    return %arg1, %arg0, %0, %c0_i32 : i32, i32, i32, i32
  }
  func.func @transform_3(%arg0: i32, %arg1: i32, %arg2: i32, %arg3: i32) -> (i32, i32, i32) {
    %c0_i32 = arith.constant 0 : i32
    %c0_i32_0 = arith.constant 0 : i32
    %c0_i32_1 = arith.constant 0 : i32
    return %arg0, %c0_i32, %c0_i32_0 : i32, i32, i32
  }
  func.func @transform_4(%arg0: i32, %arg1: i32, %arg2: i32, %arg3: i32) -> (i32, i32) {
    %c0_i32 = arith.constant 0 : i32
    %c0_i32_0 = arith.constant 0 : i32
    %c0_i32_1 = arith.constant 0 : i32
    return %c0_i32, %c0_i32_0 : i32, i32
  }
  func.func @transform_6(%arg0: i32, %arg1: i32, %arg2: i32, %arg3: i32) -> (i32, i32, i32) {
    %c6_i32 = arith.constant 6 : i32
    %0 = arith.addi %c6_i32, %arg0 : i32
    %c0_i32 = arith.constant 0 : i32
    return %arg1, %arg2, %0 : i32, i32, i32
  }
}

module attributes {stable_mosaic.version = 11 : i64} {
  func.func @_fused_pre_kernel(%arg0: i32, %arg1: i32, %arg2: memref<6x4xf32, #tpu.memory_space<smem>>, %arg3: memref<6xf32, #tpu.memory_space<smem>>, %arg4: memref<1x8x768xf32, #tpu.memory_space<vmem>>, %arg5: memref<1x128xf32, #tpu.memory_space<vmem>>, %arg6: memref<1x128xf32, #tpu.memory_space<vmem>>, %arg7: memref<4x128x96xbf16, #tpu.memory_space<vmem>>, %arg8: memref<4x1x96xf32, #tpu.memory_space<vmem>>, %arg9: memref<1x128xf32, #tpu.memory_space<vmem>>, %arg10: memref<1x128xf32, #tpu.memory_space<vmem>>, %arg11: memref<128x256xbf16, #tpu.memory_space<vmem>>, %arg12: memref<1x256xf32, #tpu.memory_space<vmem>>, %arg13: memref<256x128xbf16, #tpu.memory_space<vmem>>, %arg14: memref<1x128xf32, #tpu.memory_space<vmem>>, %arg15: memref<1x4x8x32xbf16, #tpu.memory_space<vmem>>, %arg16: memref<1x4x8x32xbf16, #tpu.memory_space<vmem>>, %arg17: memref<1x4x8x32xbf16, #tpu.memory_space<vmem>>, %arg18: memref<1x8x1408xf32, #tpu.memory_space<vmem>>) attributes {dimension_semantics = [#tpu.dimension_semantics<parallel>, #tpu.dimension_semantics<parallel>], iteration_bounds = array<i64: 1, 2>, scalar_prefetch = 0 : i64, scratch_operands = 0 : i64, tpu.core_type = #tpu.core_type<tc>, window_params = [{transform_indices = @transform_0, window_bounds = array<i64: 6, 4>}, {transform_indices = @transform_1, window_bounds = array<i64: 6>}, {transform_indices = @transform_2, window_bounds = array<i64: 1, 8, 768>}, {pipeline_mode = #tpu.pipeline_mode<synchronous>, transform_indices = @transform_3, window_bounds = array<i64: 1, 128>}, {pipeline_mode = #tpu.pipeline_mode<synchronous>, transform_indices = @transform_4, window_bounds = array<i64: 1, 128>}, {pipeline_mode = #tpu.pipeline_mode<synchronous>, transform_indices = @transform_5, window_bounds = array<i64: 4, 128, 96>}, {pipeline_mode = #tpu.pipeline_mode<synchronous>, transform_indices = @transform_6, window_bounds = array<i64: 4, 1, 96>}, {pipeline_mode = #tpu.pipeline_mode<synchronous>, transform_indices = @transform_7, window_bounds = array<i64: 1, 128>}, {pipeline_mode = #tpu.pipeline_mode<synchronous>, transform_indices = @transform_8, window_bounds = array<i64: 1, 128>}, {pipeline_mode = #tpu.pipeline_mode<synchronous>, transform_indices = @transform_9, window_bounds = array<i64: 128, 256>}, {pipeline_mode = #tpu.pipeline_mode<synchronous>, transform_indices = @transform_10, window_bounds = array<i64: 1, 256>}, {pipeline_mode = #tpu.pipeline_mode<synchronous>, transform_indices = @transform_11, window_bounds = array<i64: 256, 128>}, {pipeline_mode = #tpu.pipeline_mode<synchronous>, transform_indices = @transform_12, window_bounds = array<i64: 1, 128>}, {transform_indices = @transform_13, window_bounds = array<i64: 1, 4, 8, 32>}, {transform_indices = @transform_14, window_bounds = array<i64: 1, 4, 8, 32>}, {transform_indices = @transform_15, window_bounds = array<i64: 1, 4, 8, 32>}, {transform_indices = @transform_16, window_bounds = array<i64: 1, 8, 1408>}]} {
    %c0 = arith.constant 0 : index
    %c0_0 = arith.constant 0 : index
    %c0_1 = arith.constant 0 : index
    %0 = vector.load %arg4[%c0, %c0_0, %c0_1] : memref<1x8x768xf32, #tpu.memory_space<vmem>>, vector<1x8x768xf32>
    %1 = vector.shape_cast %0 : vector<1x8x768xf32> to vector<8x768xf32>
    %c0_2 = arith.constant 0 : index
    %c0_3 = arith.constant 0 : index
    %c0_4 = arith.constant 0 : index
    %2 = vector.load %arg18[%c0_2, %c0_3, %c0_4] : memref<1x8x1408xf32, #tpu.memory_space<vmem>>, vector<1x8x768xf32>
    %3 = vector.shape_cast %2 : vector<1x8x768xf32> to vector<8x768xf32>
    %4 = vector.shape_cast %1 : vector<8x768xf32> to vector<1x8x768xf32>
    tpu.vector_store %arg18[%c0_2, %c0_3, %c0_4], %4 {strides = array<i32>} : memref<1x8x1408xf32, #tpu.memory_space<vmem>>, vector<1x8x768xf32>,
    %c0_5 = arith.constant 0 : index
    %c0_6 = arith.constant 0 : index
    %5 = vector.load %arg5[%c0_5, %c0_6] : memref<1x128xf32, #tpu.memory_space<vmem>>, vector<1x128xf32>
    %c0_7 = arith.constant 0 : index
    %c0_8 = arith.constant 0 : index
    %6 = vector.load %arg6[%c0_7, %c0_8] : memref<1x128xf32, #tpu.memory_space<vmem>>, vector<1x128xf32>
    %7 = vector.extract_strided_slice %1 {offsets = [0, 0], sizes = [8, 128], strides = [1, 1]} : vector<8x768xf32> to vector<8x128xf32>
    %c0_9 = arith.constant 0 : index
    %c0_10 = arith.constant 0 : index
    %8 = memref.load %arg2[%c0_9, %c0_10] : memref<6x4xf32, #tpu.memory_space<smem>>
    %9 = vector.broadcast %8 : f32 to vector<8x128xf32>
    %10 = arith.mulf %7, %9 : vector<8x128xf32>
    %11 = vector.extract_strided_slice %1 {offsets = [0, 128], sizes = [8, 128], strides = [1, 1]} : vector<8x768xf32> to vector<8x128xf32>
    %c1 = arith.constant 1 : index
    %c0_11 = arith.constant 0 : index
    %12 = memref.load %arg2[%c1, %c0_11] : memref<6x4xf32, #tpu.memory_space<smem>>
    %13 = vector.broadcast %12 : f32 to vector<8x128xf32>
    %14 = arith.mulf %11, %13 : vector<8x128xf32>
    %15 = arith.addf %10, %14 : vector<8x128xf32>
    %16 = vector.extract_strided_slice %1 {offsets = [0, 256], sizes = [8, 128], strides = [1, 1]} : vector<8x768xf32> to vector<8x128xf32>
    %c2 = arith.constant 2 : index
    %c0_12 = arith.constant 0 : index
    %17 = memref.load %arg2[%c2, %c0_12] : memref<6x4xf32, #tpu.memory_space<smem>>
    %18 = vector.broadcast %17 : f32 to vector<8x128xf32>
    %19 = arith.mulf %16, %18 : vector<8x128xf32>
    %20 = arith.addf %15, %19 : vector<8x128xf32>
    %21 = vector.extract_strided_slice %1 {offsets = [0, 384], sizes = [8, 128], strides = [1, 1]} : vector<8x768xf32> to vector<8x128xf32>
    %c3 = arith.constant 3 : index
    %c0_13 = arith.constant 0 : index
    %22 = memref.load %arg2[%c3, %c0_13] : memref<6x4xf32, #tpu.memory_space<smem>>
    %23 = vector.broadcast %22 : f32 to vector<8x128xf32>
    %24 = arith.mulf %21, %23 : vector<8x128xf32>
    %25 = arith.addf %20, %24 : vector<8x128xf32>
    %26 = vector.extract_strided_slice %1 {offsets = [0, 512], sizes = [8, 128], strides = [1, 1]} : vector<8x768xf32> to vector<8x128xf32>
    %c4 = arith.constant 4 : index
    %c0_14 = arith.constant 0 : index
    %27 = memref.load %arg2[%c4, %c0_14] : memref<6x4xf32, #tpu.memory_space<smem>>
    %28 = vector.broadcast %27 : f32 to vector<8x128xf32>
    %29 = arith.mulf %26, %28 : vector<8x128xf32>
    %30 = arith.addf %25, %29 : vector<8x128xf32>
    %31 = vector.extract_strided_slice %1 {offsets = [0, 640], sizes = [8, 128], strides = [1, 1]} : vector<8x768xf32> to vector<8x128xf32>
    %c5 = arith.constant 5 : index
    %c0_15 = arith.constant 0 : index
    %32 = memref.load %arg2[%c5, %c0_15] : memref<6x4xf32, #tpu.memory_space<smem>>
    %33 = vector.broadcast %32 : f32 to vector<8x128xf32>
    %34 = arith.mulf %31, %33 : vector<8x128xf32>
    %35 = arith.addf %30, %34 : vector<8x128xf32>
    %cst = arith.constant dense<0.000000e+00> : vector<8xf32>
    %36 = vector.multi_reduction <add>, %35, %cst [1] : vector<8x128xf32> to vector<8xf32>
    %37 = vector.shape_cast %36 : vector<8xf32> to vector<8x1xf32>
    %cst_16 = arith.constant 1.280000e+02 : f32
    %38 = vector.broadcast %cst_16 : f32 to vector<8x1xf32>
    %39 = arith.divf %37, %38 : vector<8x1xf32>
    %40 = vector.broadcast %39 : vector<8x1xf32> to vector<8x128xf32>
    %41 = arith.subf %35, %40 : vector<8x128xf32>
    %42 = arith.mulf %41, %41 : vector<8x128xf32>
    %cst_17 = arith.constant dense<0.000000e+00> : vector<8xf32>
    %43 = vector.multi_reduction <add>, %42, %cst_17 [1] : vector<8x128xf32> to vector<8xf32>
    %44 = vector.shape_cast %43 : vector<8xf32> to vector<8x1xf32>
    %cst_18 = arith.constant 1.280000e+02 : f32
    %45 = vector.broadcast %cst_18 : f32 to vector<8x1xf32>
    %46 = arith.divf %44, %45 : vector<8x1xf32>
    %cst_19 = arith.constant 9.99999974E-6 : f32
    %47 = vector.broadcast %cst_19 : f32 to vector<8x1xf32>
    %48 = arith.addf %46, %47 : vector<8x1xf32>
    %49 = math.rsqrt %48 : vector<8x1xf32>
    %50 = vector.broadcast %49 : vector<8x1xf32> to vector<8x128xf32>
    %51 = arith.mulf %41, %50 : vector<8x128xf32>
    %52 = vector.broadcast %5 : vector<1x128xf32> to vector<8x128xf32>
    %53 = arith.mulf %51, %52 : vector<8x128xf32>
    %54 = vector.broadcast %6 : vector<1x128xf32> to vector<8x128xf32>
    %55 = arith.addf %53, %54 : vector<8x128xf32>
    %56 = arith.truncf %55 : vector<8x128xf32> to vector<8x128xbf16>
    %c0_20 = arith.constant 0 : index
    %c0_21 = arith.constant 0 : index
    %c0_22 = arith.constant 0 : index
    %57 = vector.load %arg7[%c0_20, %c0_21, %c0_22] : memref<4x128x96xbf16, #tpu.memory_space<vmem>>, vector<1x128x96xbf16>
    %58 = vector.shape_cast %57 : vector<1x128x96xbf16> to vector<128x96xbf16>
    %cst_23 = arith.constant dense<0.000000e+00> : vector<8x96xf32>
    %59 = tpu.matmul %56, %58, %cst_23 {dimension_numbers = #tpu.dot_dimension_numbers<[1], [0], [0], [1], [0, 0, 1, 1], [], []>} : vector<8x128xbf16>, vector<128x96xbf16>, vector<8x96xf32> -> vector<8x96xf32>
    %c0_24 = arith.constant 0 : index
    %c0_25 = arith.constant 0 : index
    %c0_26 = arith.constant 0 : index
    %60 = vector.load %arg8[%c0_24, %c0_25, %c0_26] : memref<4x1x96xf32, #tpu.memory_space<vmem>>, vector<1x1x96xf32>
    %61 = vector.shape_cast %60 : vector<1x1x96xf32> to vector<1x96xf32>
    %62 = vector.broadcast %61 : vector<1x96xf32> to vector<8x96xf32>
    %63 = arith.addf %59, %62 : vector<8x96xf32>
    %64 = vector.extract_strided_slice %63 {offsets = [0, 0], sizes = [8, 32], strides = [1, 1]} : vector<8x96xf32> to vector<8x32xf32>
    %65 = arith.truncf %64 : vector<8x32xf32> to vector<8x32xbf16>
    %c0_27 = arith.constant 0 : index
    %c0_28 = arith.constant 0 : index
    %c0_29 = arith.constant 0 : index
    %c0_30 = arith.constant 0 : index
    %66 = vector.load %arg15[%c0_27, %c0_28, %c0_29, %c0_30] : memref<1x4x8x32xbf16, #tpu.memory_space<vmem>>, vector<1x1x8x32xbf16>
    %67 = vector.shape_cast %66 : vector<1x1x8x32xbf16> to vector<8x32xbf16>
    %68 = vector.shape_cast %65 : vector<8x32xbf16> to vector<1x1x8x32xbf16>
    tpu.vector_store %arg15[%c0_27, %c0_28, %c0_29, %c0_30], %68 {strides = array<i32>} : memref<1x4x8x32xbf16, #tpu.memory_space<vmem>>, vector<1x1x8x32xbf16>,
    %69 = vector.extract_strided_slice %63 {offsets = [0, 32], sizes = [8, 32], strides = [1, 1]} : vector<8x96xf32> to vector<8x32xf32>
    %70 = arith.truncf %69 : vector<8x32xf32> to vector<8x32xbf16>
    %c0_31 = arith.constant 0 : index
    %c0_32 = arith.constant 0 : index
    %c0_33 = arith.constant 0 : index
    %c0_34 = arith.constant 0 : index
    %71 = vector.load %arg16[%c0_31, %c0_32, %c0_33, %c0_34] : memref<1x4x8x32xbf16, #tpu.memory_space<vmem>>, vector<1x1x8x32xbf16>
    %72 = vector.shape_cast %71 : vector<1x1x8x32xbf16> to vector<8x32xbf16>
    %73 = vector.shape_cast %70 : vector<8x32xbf16> to vector<1x1x8x32xbf16>
    tpu.vector_store %arg16[%c0_31, %c0_32, %c0_33, %c0_34], %73 {strides = array<i32>} : memref<1x4x8x32xbf16, #tpu.memory_space<vmem>>, vector<1x1x8x32xbf16>,
    %74 = vector.extract_strided_slice %63 {offsets = [0, 64], sizes = [8, 32], strides = [1, 1]} : vector<8x96xf32> to vector<8x32xf32>
    %75 = arith.truncf %74 : vector<8x32xf32> to vector<8x32xbf16>
    %c0_35 = arith.constant 0 : index
    %c0_36 = arith.constant 0 : index
    %c0_37 = arith.constant 0 : index
    %c0_38 = arith.constant 0 : index
    %76 = vector.load %arg17[%c0_35, %c0_36, %c0_37, %c0_38] : memref<1x4x8x32xbf16, #tpu.memory_space<vmem>>, vector<1x1x8x32xbf16>
    %77 = vector.shape_cast %76 : vector<1x1x8x32xbf16> to vector<8x32xbf16>
    %78 = vector.shape_cast %75 : vector<8x32xbf16> to vector<1x1x8x32xbf16>
    tpu.vector_store %arg17[%c0_35, %c0_36, %c0_37, %c0_38], %78 {strides = array<i32>} : memref<1x4x8x32xbf16, #tpu.memory_space<vmem>>, vector<1x1x8x32xbf16>,
    %79 = vector.extract_strided_slice %1 {offsets = [0, 0], sizes = [8, 128], strides = [1, 1]} : vector<8x768xf32> to vector<8x128xf32>
    %c0_39 = arith.constant 0 : index
    %c1_40 = arith.constant 1 : index
    %80 = memref.load %arg2[%c0_39, %c1_40] : memref<6x4xf32, #tpu.memory_space<smem>>
    %81 = vector.broadcast %80 : f32 to vector<8x128xf32>
    %82 = arith.mulf %79, %81 : vector<8x128xf32>
    %83 = vector.extract_strided_slice %1 {offsets = [0, 128], sizes = [8, 128], strides = [1, 1]} : vector<8x768xf32> to vector<8x128xf32>
    %c1_41 = arith.constant 1 : index
    %c1_42 = arith.constant 1 : index
    %84 = memref.load %arg2[%c1_41, %c1_42] : memref<6x4xf32, #tpu.memory_space<smem>>
    %85 = vector.broadcast %84 : f32 to vector<8x128xf32>
    %86 = arith.mulf %83, %85 : vector<8x128xf32>
    %87 = arith.addf %82, %86 : vector<8x128xf32>
    %88 = vector.extract_strided_slice %1 {offsets = [0, 256], sizes = [8, 128], strides = [1, 1]} : vector<8x768xf32> to vector<8x128xf32>
    %c2_43 = arith.constant 2 : index
    %c1_44 = arith.constant 1 : index
    %89 = memref.load %arg2[%c2_43, %c1_44] : memref<6x4xf32, #tpu.memory_space<smem>>
    %90 = vector.broadcast %89 : f32 to vector<8x128xf32>
    %91 = arith.mulf %88, %90 : vector<8x128xf32>
    %92 = arith.addf %87, %91 : vector<8x128xf32>
    %93 = vector.extract_strided_slice %1 {offsets = [0, 384], sizes = [8, 128], strides = [1, 1]} : vector<8x768xf32> to vector<8x128xf32>
    %c3_45 = arith.constant 3 : index
    %c1_46 = arith.constant 1 : index
    %94 = memref.load %arg2[%c3_45, %c1_46] : memref<6x4xf32, #tpu.memory_space<smem>>
    %95 = vector.broadcast %94 : f32 to vector<8x128xf32>
    %96 = arith.mulf %93, %95 : vector<8x128xf32>
    %97 = arith.addf %92, %96 : vector<8x128xf32>
    %98 = vector.extract_strided_slice %1 {offsets = [0, 512], sizes = [8, 128], strides = [1, 1]} : vector<8x768xf32> to vector<8x128xf32>
    %c4_47 = arith.constant 4 : index
    %c1_48 = arith.constant 1 : index
    %99 = memref.load %arg2[%c4_47, %c1_48] : memref<6x4xf32, #tpu.memory_space<smem>>
    %100 = vector.broadcast %99 : f32 to vector<8x128xf32>
    %101 = arith.mulf %98, %100 : vector<8x128xf32>
    %102 = arith.addf %97, %101 : vector<8x128xf32>
    %103 = vector.extract_strided_slice %1 {offsets = [0, 640], sizes = [8, 128], strides = [1, 1]} : vector<8x768xf32> to vector<8x128xf32>
    %c5_49 = arith.constant 5 : index
    %c1_50 = arith.constant 1 : index
    %104 = memref.load %arg2[%c5_49, %c1_50] : memref<6x4xf32, #tpu.memory_space<smem>>
    %105 = vector.broadcast %104 : f32 to vector<8x128xf32>
    %106 = arith.mulf %103, %105 : vector<8x128xf32>
    %107 = arith.addf %102, %106 : vector<8x128xf32>
    %cst_51 = arith.constant dense<0.000000e+00> : vector<8xf32>
    %108 = vector.multi_reduction <add>, %107, %cst_51 [1] : vector<8x128xf32> to vector<8xf32>
    %109 = vector.shape_cast %108 : vector<8xf32> to vector<8x1xf32>
    %cst_52 = arith.constant 1.280000e+02 : f32
    %110 = vector.broadcast %cst_52 : f32 to vector<8x1xf32>
    %111 = arith.divf %109, %110 : vector<8x1xf32>
    %112 = vector.broadcast %111 : vector<8x1xf32> to vector<8x128xf32>
    %113 = arith.subf %107, %112 : vector<8x128xf32>
    %114 = arith.mulf %113, %113 : vector<8x128xf32>
    %cst_53 = arith.constant dense<0.000000e+00> : vector<8xf32>
    %115 = vector.multi_reduction <add>, %114, %cst_53 [1] : vector<8x128xf32> to vector<8xf32>
    %116 = vector.shape_cast %115 : vector<8xf32> to vector<8x1xf32>
    %cst_54 = arith.constant 1.280000e+02 : f32
    %117 = vector.broadcast %cst_54 : f32 to vector<8x1xf32>
    %118 = arith.divf %116, %117 : vector<8x1xf32>
    %cst_55 = arith.constant 9.99999974E-6 : f32
    %119 = vector.broadcast %cst_55 : f32 to vector<8x1xf32>
    %120 = arith.addf %118, %119 : vector<8x1xf32>
    %121 = math.rsqrt %120 : vector<8x1xf32>
    %122 = vector.broadcast %121 : vector<8x1xf32> to vector<8x128xf32>
    %123 = arith.mulf %113, %122 : vector<8x128xf32>
    %124 = vector.broadcast %5 : vector<1x128xf32> to vector<8x128xf32>
    %125 = arith.mulf %123, %124 : vector<8x128xf32>
    %126 = vector.broadcast %6 : vector<1x128xf32> to vector<8x128xf32>
    %127 = arith.addf %125, %126 : vector<8x128xf32>
    %128 = arith.truncf %127 : vector<8x128xf32> to vector<8x128xbf16>
    %c1_56 = arith.constant 1 : index
    %c0_57 = arith.constant 0 : index
    %c0_58 = arith.constant 0 : index
    %129 = vector.load %arg7[%c1_56, %c0_57, %c0_58] : memref<4x128x96xbf16, #tpu.memory_space<vmem>>, vector<1x128x96xbf16>
    %130 = vector.shape_cast %129 : vector<1x128x96xbf16> to vector<128x96xbf16>
    %cst_59 = arith.constant dense<0.000000e+00> : vector<8x96xf32>
    %131 = tpu.matmul %128, %130, %cst_59 {dimension_numbers = #tpu.dot_dimension_numbers<[1], [0], [0], [1], [0, 0, 1, 1], [], []>} : vector<8x128xbf16>, vector<128x96xbf16>, vector<8x96xf32> -> vector<8x96xf32>
    %c1_60 = arith.constant 1 : index
    %c0_61 = arith.constant 0 : index
    %c0_62 = arith.constant 0 : index
    %132 = vector.load %arg8[%c1_60, %c0_61, %c0_62] : memref<4x1x96xf32, #tpu.memory_space<vmem>>, vector<1x1x96xf32>
    %133 = vector.shape_cast %132 : vector<1x1x96xf32> to vector<1x96xf32>
    %134 = vector.broadcast %133 : vector<1x96xf32> to vector<8x96xf32>
    %135 = arith.addf %131, %134 : vector<8x96xf32>
    %136 = vector.extract_strided_slice %135 {offsets = [0, 0], sizes = [8, 32], strides = [1, 1]} : vector<8x96xf32> to vector<8x32xf32>
    %137 = arith.truncf %136 : vector<8x32xf32> to vector<8x32xbf16>
    %c0_63 = arith.constant 0 : index
    %c1_64 = arith.constant 1 : index
    %c0_65 = arith.constant 0 : index
    %c0_66 = arith.constant 0 : index
    %138 = vector.load %arg15[%c0_63, %c1_64, %c0_65, %c0_66] : memref<1x4x8x32xbf16, #tpu.memory_space<vmem>>, vector<1x1x8x32xbf16>
    %139 = vector.shape_cast %138 : vector<1x1x8x32xbf16> to vector<8x32xbf16>
    %140 = vector.shape_cast %137 : vector<8x32xbf16> to vector<1x1x8x32xbf16>
    tpu.vector_store %arg15[%c0_63, %c1_64, %c0_65, %c0_66], %140 {strides = array<i32>} : memref<1x4x8x32xbf16, #tpu.memory_space<vmem>>, vector<1x1x8x32xbf16>,
    %141 = vector.extract_strided_slice %135 {offsets = [0, 32], sizes = [8, 32], strides = [1, 1]} : vector<8x96xf32> to vector<8x32xf32>
    %142 = arith.truncf %141 : vector<8x32xf32> to vector<8x32xbf16>
    %c0_67 = arith.constant 0 : index
    %c1_68 = arith.constant 1 : index
    %c0_69 = arith.constant 0 : index
    %c0_70 = arith.constant 0 : index
    %143 = vector.load %arg16[%c0_67, %c1_68, %c0_69, %c0_70] : memref<1x4x8x32xbf16, #tpu.memory_space<vmem>>, vector<1x1x8x32xbf16>
    %144 = vector.shape_cast %143 : vector<1x1x8x32xbf16> to vector<8x32xbf16>
    %145 = vector.shape_cast %142 : vector<8x32xbf16> to vector<1x1x8x32xbf16>
    tpu.vector_store %arg16[%c0_67, %c1_68, %c0_69, %c0_70], %145 {strides = array<i32>} : memref<1x4x8x32xbf16, #tpu.memory_space<vmem>>, vector<1x1x8x32xbf16>,
    %146 = vector.extract_strided_slice %135 {offsets = [0, 64], sizes = [8, 32], strides = [1, 1]} : vector<8x96xf32> to vector<8x32xf32>
    %147 = arith.truncf %146 : vector<8x32xf32> to vector<8x32xbf16>
    %c0_71 = arith.constant 0 : index
    %c1_72 = arith.constant 1 : index
    %c0_73 = arith.constant 0 : index
    %c0_74 = arith.constant 0 : index
    %148 = vector.load %arg17[%c0_71, %c1_72, %c0_73, %c0_74] : memref<1x4x8x32xbf16, #tpu.memory_space<vmem>>, vector<1x1x8x32xbf16>
    %149 = vector.shape_cast %148 : vector<1x1x8x32xbf16> to vector<8x32xbf16>
    %150 = vector.shape_cast %147 : vector<8x32xbf16> to vector<1x1x8x32xbf16>
    tpu.vector_store %arg17[%c0_71, %c1_72, %c0_73, %c0_74], %150 {strides = array<i32>} : memref<1x4x8x32xbf16, #tpu.memory_space<vmem>>, vector<1x1x8x32xbf16>,
    %151 = vector.extract_strided_slice %1 {offsets = [0, 0], sizes = [8, 128], strides = [1, 1]} : vector<8x768xf32> to vector<8x128xf32>
    %c0_75 = arith.constant 0 : index
    %c2_76 = arith.constant 2 : index
    %152 = memref.load %arg2[%c0_75, %c2_76] : memref<6x4xf32, #tpu.memory_space<smem>>
    %153 = vector.broadcast %152 : f32 to vector<8x128xf32>
    %154 = arith.mulf %151, %153 : vector<8x128xf32>
    %155 = vector.extract_strided_slice %1 {offsets = [0, 128], sizes = [8, 128], strides = [1, 1]} : vector<8x768xf32> to vector<8x128xf32>
    %c1_77 = arith.constant 1 : index
    %c2_78 = arith.constant 2 : index
    %156 = memref.load %arg2[%c1_77, %c2_78] : memref<6x4xf32, #tpu.memory_space<smem>>
    %157 = vector.broadcast %156 : f32 to vector<8x128xf32>
    %158 = arith.mulf %155, %157 : vector<8x128xf32>
    %159 = arith.addf %154, %158 : vector<8x128xf32>
    %160 = vector.extract_strided_slice %1 {offsets = [0, 256], sizes = [8, 128], strides = [1, 1]} : vector<8x768xf32> to vector<8x128xf32>
    %c2_79 = arith.constant 2 : index
    %c2_80 = arith.constant 2 : index
    %161 = memref.load %arg2[%c2_79, %c2_80] : memref<6x4xf32, #tpu.memory_space<smem>>
    %162 = vector.broadcast %161 : f32 to vector<8x128xf32>
    %163 = arith.mulf %160, %162 : vector<8x128xf32>
    %164 = arith.addf %159, %163 : vector<8x128xf32>
    %165 = vector.extract_strided_slice %1 {offsets = [0, 384], sizes = [8, 128], strides = [1, 1]} : vector<8x768xf32> to vector<8x128xf32>
    %c3_81 = arith.constant 3 : index
    %c2_82 = arith.constant 2 : index
    %166 = memref.load %arg2[%c3_81, %c2_82] : memref<6x4xf32, #tpu.memory_space<smem>>
    %167 = vector.broadcast %166 : f32 to vector<8x128xf32>
    %168 = arith.mulf %165, %167 : vector<8x128xf32>
    %169 = arith.addf %164, %168 : vector<8x128xf32>
    %170 = vector.extract_strided_slice %1 {offsets = [0, 512], sizes = [8, 128], strides = [1, 1]} : vector<8x768xf32> to vector<8x128xf32>
    %c4_83 = arith.constant 4 : index
    %c2_84 = arith.constant 2 : index
    %171 = memref.load %arg2[%c4_83, %c2_84] : memref<6x4xf32, #tpu.memory_space<smem>>
    %172 = vector.broadcast %171 : f32 to vector<8x128xf32>
    %173 = arith.mulf %170, %172 : vector<8x128xf32>
    %174 = arith.addf %169, %173 : vector<8x128xf32>
    %175 = vector.extract_strided_slice %1 {offsets = [0, 640], sizes = [8, 128], strides = [1, 1]} : vector<8x768xf32> to vector<8x128xf32>
    %c5_85 = arith.constant 5 : index
    %c2_86 = arith.constant 2 : index
    %176 = memref.load %arg2[%c5_85, %c2_86] : memref<6x4xf32, #tpu.memory_space<smem>>
    %177 = vector.broadcast %176 : f32 to vector<8x128xf32>
    %178 = arith.mulf %175, %177 : vector<8x128xf32>
    %179 = arith.addf %174, %178 : vector<8x128xf32>
    %cst_87 = arith.constant dense<0.000000e+00> : vector<8xf32>
    %180 = vector.multi_reduction <add>, %179, %cst_87 [1] : vector<8x128xf32> to vector<8xf32>
    %181 = vector.shape_cast %180 : vector<8xf32> to vector<8x1xf32>
    %cst_88 = arith.constant 1.280000e+02 : f32
    %182 = vector.broadcast %cst_88 : f32 to vector<8x1xf32>
    %183 = arith.divf %181, %182 : vector<8x1xf32>
    %184 = vector.broadcast %183 : vector<8x1xf32> to vector<8x128xf32>
    %185 = arith.subf %179, %184 : vector<8x128xf32>
    %186 = arith.mulf %185, %185 : vector<8x128xf32>
    %cst_89 = arith.constant dense<0.000000e+00> : vector<8xf32>
    %187 = vector.multi_reduction <add>, %186, %cst_89 [1] : vector<8x128xf32> to vector<8xf32>
    %188 = vector.shape_cast %187 : vector<8xf32> to vector<8x1xf32>
    %cst_90 = arith.constant 1.280000e+02 : f32
    %189 = vector.broadcast %cst_90 : f32 to vector<8x1xf32>
    %190 = arith.divf %188, %189 : vector<8x1xf32>
    %cst_91 = arith.constant 9.99999974E-6 : f32
    %191 = vector.broadcast %cst_91 : f32 to vector<8x1xf32>
    %192 = arith.addf %190, %191 : vector<8x1xf32>
    %193 = math.rsqrt %192 : vector<8x1xf32>
    %194 = vector.broadcast %193 : vector<8x1xf32> to vector<8x128xf32>
    %195 = arith.mulf %185, %194 : vector<8x128xf32>
    %196 = vector.broadcast %5 : vector<1x128xf32> to vector<8x128xf32>
    %197 = arith.mulf %195, %196 : vector<8x128xf32>
    %198 = vector.broadcast %6 : vector<1x128xf32> to vector<8x128xf32>
    %199 = arith.addf %197, %198 : vector<8x128xf32>
    %200 = arith.truncf %199 : vector<8x128xf32> to vector<8x128xbf16>
    %c2_92 = arith.constant 2 : index
    %c0_93 = arith.constant 0 : index
    %c0_94 = arith.constant 0 : index
    %201 = vector.load %arg7[%c2_92, %c0_93, %c0_94] : memref<4x128x96xbf16, #tpu.memory_space<vmem>>, vector<1x128x96xbf16>
    %202 = vector.shape_cast %201 : vector<1x128x96xbf16> to vector<128x96xbf16>
    %cst_95 = arith.constant dense<0.000000e+00> : vector<8x96xf32>
    %203 = tpu.matmul %200, %202, %cst_95 {dimension_numbers = #tpu.dot_dimension_numbers<[1], [0], [0], [1], [0, 0, 1, 1], [], []>} : vector<8x128xbf16>, vector<128x96xbf16>, vector<8x96xf32> -> vector<8x96xf32>
    %c2_96 = arith.constant 2 : index
    %c0_97 = arith.constant 0 : index
    %c0_98 = arith.constant 0 : index
    %204 = vector.load %arg8[%c2_96, %c0_97, %c0_98] : memref<4x1x96xf32, #tpu.memory_space<vmem>>, vector<1x1x96xf32>
    %205 = vector.shape_cast %204 : vector<1x1x96xf32> to vector<1x96xf32>
    %206 = vector.broadcast %205 : vector<1x96xf32> to vector<8x96xf32>
    %207 = arith.addf %203, %206 : vector<8x96xf32>
    %208 = vector.extract_strided_slice %207 {offsets = [0, 0], sizes = [8, 32], strides = [1, 1]} : vector<8x96xf32> to vector<8x32xf32>
    %209 = arith.truncf %208 : vector<8x32xf32> to vector<8x32xbf16>
    %c0_99 = arith.constant 0 : index
    %c2_100 = arith.constant 2 : index
    %c0_101 = arith.constant 0 : index
    %c0_102 = arith.constant 0 : index
    %210 = vector.load %arg15[%c0_99, %c2_100, %c0_101, %c0_102] : memref<1x4x8x32xbf16, #tpu.memory_space<vmem>>, vector<1x1x8x32xbf16>
    %211 = vector.shape_cast %210 : vector<1x1x8x32xbf16> to vector<8x32xbf16>
    %212 = vector.shape_cast %209 : vector<8x32xbf16> to vector<1x1x8x32xbf16>
    tpu.vector_store %arg15[%c0_99, %c2_100, %c0_101, %c0_102], %212 {strides = array<i32>} : memref<1x4x8x32xbf16, #tpu.memory_space<vmem>>, vector<1x1x8x32xbf16>,
    %213 = vector.extract_strided_slice %207 {offsets = [0, 32], sizes = [8, 32], strides = [1, 1]} : vector<8x96xf32> to vector<8x32xf32>
    %214 = arith.truncf %213 : vector<8x32xf32> to vector<8x32xbf16>
    %c0_103 = arith.constant 0 : index
    %c2_104 = arith.constant 2 : index
    %c0_105 = arith.constant 0 : index
    %c0_106 = arith.constant 0 : index
    %215 = vector.load %arg16[%c0_103, %c2_104, %c0_105, %c0_106] : memref<1x4x8x32xbf16, #tpu.memory_space<vmem>>, vector<1x1x8x32xbf16>
    %216 = vector.shape_cast %215 : vector<1x1x8x32xbf16> to vector<8x32xbf16>
    %217 = vector.shape_cast %214 : vector<8x32xbf16> to vector<1x1x8x32xbf16>
    tpu.vector_store %arg16[%c0_103, %c2_104, %c0_105, %c0_106], %217 {strides = array<i32>} : memref<1x4x8x32xbf16, #tpu.memory_space<vmem>>, vector<1x1x8x32xbf16>,
    %218 = vector.extract_strided_slice %207 {offsets = [0, 64], sizes = [8, 32], strides = [1, 1]} : vector<8x96xf32> to vector<8x32xf32>
    %219 = arith.truncf %218 : vector<8x32xf32> to vector<8x32xbf16>
    %c0_107 = arith.constant 0 : index
    %c2_108 = arith.constant 2 : index
    %c0_109 = arith.constant 0 : index
    %c0_110 = arith.constant 0 : index
    %220 = vector.load %arg17[%c0_107, %c2_108, %c0_109, %c0_110] : memref<1x4x8x32xbf16, #tpu.memory_space<vmem>>, vector<1x1x8x32xbf16>
    %221 = vector.shape_cast %220 : vector<1x1x8x32xbf16> to vector<8x32xbf16>
    %222 = vector.shape_cast %219 : vector<8x32xbf16> to vector<1x1x8x32xbf16>
    tpu.vector_store %arg17[%c0_107, %c2_108, %c0_109, %c0_110], %222 {strides = array<i32>} : memref<1x4x8x32xbf16, #tpu.memory_space<vmem>>, vector<1x1x8x32xbf16>,
    %223 = vector.extract_strided_slice %1 {offsets = [0, 0], sizes = [8, 128], strides = [1, 1]} : vector<8x768xf32> to vector<8x128xf32>
    %c0_111 = arith.constant 0 : index
    %c3_112 = arith.constant 3 : index
    %224 = memref.load %arg2[%c0_111, %c3_112] : memref<6x4xf32, #tpu.memory_space<smem>>
    %225 = vector.broadcast %224 : f32 to vector<8x128xf32>
    %226 = arith.mulf %223, %225 : vector<8x128xf32>
    %227 = vector.extract_strided_slice %1 {offsets = [0, 128], sizes = [8, 128], strides = [1, 1]} : vector<8x768xf32> to vector<8x128xf32>
    %c1_113 = arith.constant 1 : index
    %c3_114 = arith.constant 3 : index
    %228 = memref.load %arg2[%c1_113, %c3_114] : memref<6x4xf32, #tpu.memory_space<smem>>
    %229 = vector.broadcast %228 : f32 to vector<8x128xf32>
    %230 = arith.mulf %227, %229 : vector<8x128xf32>
    %231 = arith.addf %226, %230 : vector<8x128xf32>
    %232 = vector.extract_strided_slice %1 {offsets = [0, 256], sizes = [8, 128], strides = [1, 1]} : vector<8x768xf32> to vector<8x128xf32>
    %c2_115 = arith.constant 2 : index
    %c3_116 = arith.constant 3 : index
    %233 = memref.load %arg2[%c2_115, %c3_116] : memref<6x4xf32, #tpu.memory_space<smem>>
    %234 = vector.broadcast %233 : f32 to vector<8x128xf32>
    %235 = arith.mulf %232, %234 : vector<8x128xf32>
    %236 = arith.addf %231, %235 : vector<8x128xf32>
    %237 = vector.extract_strided_slice %1 {offsets = [0, 384], sizes = [8, 128], strides = [1, 1]} : vector<8x768xf32> to vector<8x128xf32>
    %c3_117 = arith.constant 3 : index
    %c3_118 = arith.constant 3 : index
    %238 = memref.load %arg2[%c3_117, %c3_118] : memref<6x4xf32, #tpu.memory_space<smem>>
    %239 = vector.broadcast %238 : f32 to vector<8x128xf32>
    %240 = arith.mulf %237, %239 : vector<8x128xf32>
    %241 = arith.addf %236, %240 : vector<8x128xf32>
    %242 = vector.extract_strided_slice %1 {offsets = [0, 512], sizes = [8, 128], strides = [1, 1]} : vector<8x768xf32> to vector<8x128xf32>
    %c4_119 = arith.constant 4 : index
    %c3_120 = arith.constant 3 : index
    %243 = memref.load %arg2[%c4_119, %c3_120] : memref<6x4xf32, #tpu.memory_space<smem>>
    %244 = vector.broadcast %243 : f32 to vector<8x128xf32>
    %245 = arith.mulf %242, %244 : vector<8x128xf32>
    %246 = arith.addf %241, %245 : vector<8x128xf32>
    %247 = vector.extract_strided_slice %1 {offsets = [0, 640], sizes = [8, 128], strides = [1, 1]} : vector<8x768xf32> to vector<8x128xf32>
    %c5_121 = arith.constant 5 : index
    %c3_122 = arith.constant 3 : index
    %248 = memref.load %arg2[%c5_121, %c3_122] : memref<6x4xf32, #tpu.memory_space<smem>>
    %249 = vector.broadcast %248 : f32 to vector<8x128xf32>
    %250 = arith.mulf %247, %249 : vector<8x128xf32>
    %251 = arith.addf %246, %250 : vector<8x128xf32>
    %cst_123 = arith.constant dense<0.000000e+00> : vector<8xf32>
    %252 = vector.multi_reduction <add>, %251, %cst_123 [1] : vector<8x128xf32> to vector<8xf32>
    %253 = vector.shape_cast %252 : vector<8xf32> to vector<8x1xf32>
    %cst_124 = arith.constant 1.280000e+02 : f32
    %254 = vector.broadcast %cst_124 : f32 to vector<8x1xf32>
    %255 = arith.divf %253, %254 : vector<8x1xf32>
    %256 = vector.broadcast %255 : vector<8x1xf32> to vector<8x128xf32>
    %257 = arith.subf %251, %256 : vector<8x128xf32>
    %258 = arith.mulf %257, %257 : vector<8x128xf32>
    %cst_125 = arith.constant dense<0.000000e+00> : vector<8xf32>
    %259 = vector.multi_reduction <add>, %258, %cst_125 [1] : vector<8x128xf32> to vector<8xf32>
    %260 = vector.shape_cast %259 : vector<8xf32> to vector<8x1xf32>
    %cst_126 = arith.constant 1.280000e+02 : f32
    %261 = vector.broadcast %cst_126 : f32 to vector<8x1xf32>
    %262 = arith.divf %260, %261 : vector<8x1xf32>
    %cst_127 = arith.constant 9.99999974E-6 : f32
    %263 = vector.broadcast %cst_127 : f32 to vector<8x1xf32>
    %264 = arith.addf %262, %263 : vector<8x1xf32>
    %265 = math.rsqrt %264 : vector<8x1xf32>
    %266 = vector.broadcast %265 : vector<8x1xf32> to vector<8x128xf32>
    %267 = arith.mulf %257, %266 : vector<8x128xf32>
    %268 = vector.broadcast %5 : vector<1x128xf32> to vector<8x128xf32>
    %269 = arith.mulf %267, %268 : vector<8x128xf32>
    %270 = vector.broadcast %6 : vector<1x128xf32> to vector<8x128xf32>
    %271 = arith.addf %269, %270 : vector<8x128xf32>
    %272 = arith.truncf %271 : vector<8x128xf32> to vector<8x128xbf16>
    %c3_128 = arith.constant 3 : index
    %c0_129 = arith.constant 0 : index
    %c0_130 = arith.constant 0 : index
    %273 = vector.load %arg7[%c3_128, %c0_129, %c0_130] : memref<4x128x96xbf16, #tpu.memory_space<vmem>>, vector<1x128x96xbf16>
    %274 = vector.shape_cast %273 : vector<1x128x96xbf16> to vector<128x96xbf16>
    %cst_131 = arith.constant dense<0.000000e+00> : vector<8x96xf32>
    %275 = tpu.matmul %272, %274, %cst_131 {dimension_numbers = #tpu.dot_dimension_numbers<[1], [0], [0], [1], [0, 0, 1, 1], [], []>} : vector<8x128xbf16>, vector<128x96xbf16>, vector<8x96xf32> -> vector<8x96xf32>
    %c3_132 = arith.constant 3 : index
    %c0_133 = arith.constant 0 : index
    %c0_134 = arith.constant 0 : index
    %276 = vector.load %arg8[%c3_132, %c0_133, %c0_134] : memref<4x1x96xf32, #tpu.memory_space<vmem>>, vector<1x1x96xf32>
    %277 = vector.shape_cast %276 : vector<1x1x96xf32> to vector<1x96xf32>
    %278 = vector.broadcast %277 : vector<1x96xf32> to vector<8x96xf32>
    %279 = arith.addf %275, %278 : vector<8x96xf32>
    %280 = vector.extract_strided_slice %279 {offsets = [0, 0], sizes = [8, 32], strides = [1, 1]} : vector<8x96xf32> to vector<8x32xf32>
    %281 = arith.truncf %280 : vector<8x32xf32> to vector<8x32xbf16>
    %c0_135 = arith.constant 0 : index
    %c3_136 = arith.constant 3 : index
    %c0_137 = arith.constant 0 : index
    %c0_138 = arith.constant 0 : index
    %282 = vector.load %arg15[%c0_135, %c3_136, %c0_137, %c0_138] : memref<1x4x8x32xbf16, #tpu.memory_space<vmem>>, vector<1x1x8x32xbf16>
    %283 = vector.shape_cast %282 : vector<1x1x8x32xbf16> to vector<8x32xbf16>
    %284 = vector.shape_cast %281 : vector<8x32xbf16> to vector<1x1x8x32xbf16>
    tpu.vector_store %arg15[%c0_135, %c3_136, %c0_137, %c0_138], %284 {strides = array<i32>} : memref<1x4x8x32xbf16, #tpu.memory_space<vmem>>, vector<1x1x8x32xbf16>,
    %285 = vector.extract_strided_slice %279 {offsets = [0, 32], sizes = [8, 32], strides = [1, 1]} : vector<8x96xf32> to vector<8x32xf32>
    %286 = arith.truncf %285 : vector<8x32xf32> to vector<8x32xbf16>
    %c0_139 = arith.constant 0 : index
    %c3_140 = arith.constant 3 : index
    %c0_141 = arith.constant 0 : index
    %c0_142 = arith.constant 0 : index
    %287 = vector.load %arg16[%c0_139, %c3_140, %c0_141, %c0_142] : memref<1x4x8x32xbf16, #tpu.memory_space<vmem>>, vector<1x1x8x32xbf16>
    %288 = vector.shape_cast %287 : vector<1x1x8x32xbf16> to vector<8x32xbf16>
    %289 = vector.shape_cast %286 : vector<8x32xbf16> to vector<1x1x8x32xbf16>
    tpu.vector_store %arg16[%c0_139, %c3_140, %c0_141, %c0_142], %289 {strides = array<i32>} : memref<1x4x8x32xbf16, #tpu.memory_space<vmem>>, vector<1x1x8x32xbf16>,
    %290 = vector.extract_strided_slice %279 {offsets = [0, 64], sizes = [8, 32], strides = [1, 1]} : vector<8x96xf32> to vector<8x32xf32>
    %291 = arith.truncf %290 : vector<8x32xf32> to vector<8x32xbf16>
    %c0_143 = arith.constant 0 : index
    %c3_144 = arith.constant 3 : index
    %c0_145 = arith.constant 0 : index
    %c0_146 = arith.constant 0 : index
    %292 = vector.load %arg17[%c0_143, %c3_144, %c0_145, %c0_146] : memref<1x4x8x32xbf16, #tpu.memory_space<vmem>>, vector<1x1x8x32xbf16>
    %293 = vector.shape_cast %292 : vector<1x1x8x32xbf16> to vector<8x32xbf16>
    %294 = vector.shape_cast %291 : vector<8x32xbf16> to vector<1x1x8x32xbf16>
    tpu.vector_store %arg17[%c0_143, %c3_144, %c0_145, %c0_146], %294 {strides = array<i32>} : memref<1x4x8x32xbf16, #tpu.memory_space<vmem>>, vector<1x1x8x32xbf16>,
    %c0_147 = arith.constant 0 : index
    %c0_148 = arith.constant 0 : index
    %295 = vector.load %arg9[%c0_147, %c0_148] : memref<1x128xf32, #tpu.memory_space<vmem>>, vector<1x128xf32>
    %c0_149 = arith.constant 0 : index
    %c0_150 = arith.constant 0 : index
    %296 = vector.load %arg10[%c0_149, %c0_150] : memref<1x128xf32, #tpu.memory_space<vmem>>, vector<1x128xf32>
    %297 = vector.extract_strided_slice %1 {offsets = [0, 0], sizes = [8, 128], strides = [1, 1]} : vector<8x768xf32> to vector<8x128xf32>
    %c0_151 = arith.constant 0 : index
    %298 = memref.load %arg3[%c0_151] : memref<6xf32, #tpu.memory_space<smem>>
    %299 = vector.broadcast %298 : f32 to vector<8x128xf32>
    %300 = arith.mulf %297, %299 : vector<8x128xf32>
    %301 = vector.extract_strided_slice %1 {offsets = [0, 128], sizes = [8, 128], strides = [1, 1]} : vector<8x768xf32> to vector<8x128xf32>
    %c1_152 = arith.constant 1 : index
    %302 = memref.load %arg3[%c1_152] : memref<6xf32, #tpu.memory_space<smem>>
    %303 = vector.broadcast %302 : f32 to vector<8x128xf32>
    %304 = arith.mulf %301, %303 : vector<8x128xf32>
    %305 = arith.addf %300, %304 : vector<8x128xf32>
    %306 = vector.extract_strided_slice %1 {offsets = [0, 256], sizes = [8, 128], strides = [1, 1]} : vector<8x768xf32> to vector<8x128xf32>
    %c2_153 = arith.constant 2 : index
    %307 = memref.load %arg3[%c2_153] : memref<6xf32, #tpu.memory_space<smem>>
    %308 = vector.broadcast %307 : f32 to vector<8x128xf32>
    %309 = arith.mulf %306, %308 : vector<8x128xf32>
    %310 = arith.addf %305, %309 : vector<8x128xf32>
    %311 = vector.extract_strided_slice %1 {offsets = [0, 384], sizes = [8, 128], strides = [1, 1]} : vector<8x768xf32> to vector<8x128xf32>
    %c3_154 = arith.constant 3 : index
    %312 = memref.load %arg3[%c3_154] : memref<6xf32, #tpu.memory_space<smem>>
    %313 = vector.broadcast %312 : f32 to vector<8x128xf32>
    %314 = arith.mulf %311, %313 : vector<8x128xf32>
    %315 = arith.addf %310, %314 : vector<8x128xf32>
    %316 = vector.extract_strided_slice %1 {offsets = [0, 512], sizes = [8, 128], strides = [1, 1]} : vector<8x768xf32> to vector<8x128xf32>
    %c4_155 = arith.constant 4 : index
    %317 = memref.load %arg3[%c4_155] : memref<6xf32, #tpu.memory_space<smem>>
    %318 = vector.broadcast %317 : f32 to vector<8x128xf32>
    %319 = arith.mulf %316, %318 : vector<8x128xf32>
    %320 = arith.addf %315, %319 : vector<8x128xf32>
    %321 = vector.extract_strided_slice %1 {offsets = [0, 640], sizes = [8, 128], strides = [1, 1]} : vector<8x768xf32> to vector<8x128xf32>
    %c5_156 = arith.constant 5 : index
    %322 = memref.load %arg3[%c5_156] : memref<6xf32, #tpu.memory_space<smem>>
    %323 = vector.broadcast %322 : f32 to vector<8x128xf32>
    %324 = arith.mulf %321, %323 : vector<8x128xf32>
    %325 = arith.addf %320, %324 : vector<8x128xf32>
    %cst_157 = arith.constant dense<0.000000e+00> : vector<8xf32>
    %326 = vector.multi_reduction <add>, %325, %cst_157 [1] : vector<8x128xf32> to vector<8xf32>
    %327 = vector.shape_cast %326 : vector<8xf32> to vector<8x1xf32>
    %cst_158 = arith.constant 1.280000e+02 : f32
    %328 = vector.broadcast %cst_158 : f32 to vector<8x1xf32>
    %329 = arith.divf %327, %328 : vector<8x1xf32>
    %330 = vector.broadcast %329 : vector<8x1xf32> to vector<8x128xf32>
    %331 = arith.subf %325, %330 : vector<8x128xf32>
    %332 = arith.mulf %331, %331 : vector<8x128xf32>
    %cst_159 = arith.constant dense<0.000000e+00> : vector<8xf32>
    %333 = vector.multi_reduction <add>, %332, %cst_159 [1] : vector<8x128xf32> to vector<8xf32>
    %334 = vector.shape_cast %333 : vector<8xf32> to vector<8x1xf32>
    %cst_160 = arith.constant 1.280000e+02 : f32
    %335 = vector.broadcast %cst_160 : f32 to vector<8x1xf32>
    %336 = arith.divf %334, %335 : vector<8x1xf32>
    %cst_161 = arith.constant 9.99999974E-6 : f32
    %337 = vector.broadcast %cst_161 : f32 to vector<8x1xf32>
    %338 = arith.addf %336, %337 : vector<8x1xf32>
    %339 = math.rsqrt %338 : vector<8x1xf32>
    %340 = vector.broadcast %339 : vector<8x1xf32> to vector<8x128xf32>
    %341 = arith.mulf %331, %340 : vector<8x128xf32>
    %342 = vector.broadcast %295 : vector<1x128xf32> to vector<8x128xf32>
    %343 = arith.mulf %341, %342 : vector<8x128xf32>
    %344 = vector.broadcast %296 : vector<1x128xf32> to vector<8x128xf32>
    %345 = arith.addf %343, %344 : vector<8x128xf32>
    %346 = arith.truncf %345 : vector<8x128xf32> to vector<8x128xbf16>
    %c0_162 = arith.constant 0 : index
    %c0_163 = arith.constant 0 : index
    %347 = vector.load %arg11[%c0_162, %c0_163] : memref<128x256xbf16, #tpu.memory_space<vmem>>, vector<128x256xbf16>
    %cst_164 = arith.constant dense<0.000000e+00> : vector<8x256xf32>
    %348 = tpu.matmul %346, %347, %cst_164 {dimension_numbers = #tpu.dot_dimension_numbers<[1], [0], [0], [1], [0, 0, 1, 1], [], []>} : vector<8x128xbf16>, vector<128x256xbf16>, vector<8x256xf32> -> vector<8x256xf32>
    %c0_165 = arith.constant 0 : index
    %c0_166 = arith.constant 0 : index
    %349 = vector.load %arg12[%c0_165, %c0_166] : memref<1x256xf32, #tpu.memory_space<vmem>>, vector<1x256xf32>
    %350 = vector.broadcast %349 : vector<1x256xf32> to vector<8x256xf32>
    %351 = arith.addf %348, %350 : vector<8x256xf32>
    %cst_167 = arith.constant 5.000000e-01 : f32
    %352 = vector.broadcast %cst_167 : f32 to vector<8x256xf32>
    %353 = arith.mulf %352, %351 : vector<8x256xf32>
    %cst_168 = arith.constant 4.471500e-02 : f32
    %354 = vector.broadcast %cst_168 : f32 to vector<8x256xf32>
    %355 = arith.mulf %354, %351 : vector<8x256xf32>
    %356 = arith.mulf %355, %351 : vector<8x256xf32>
    %357 = arith.mulf %356, %351 : vector<8x256xf32>
    %358 = arith.addf %351, %357 : vector<8x256xf32>
    %cst_169 = arith.constant 0.797884583 : f32
    %359 = vector.broadcast %cst_169 : f32 to vector<8x256xf32>
    %360 = arith.mulf %359, %358 : vector<8x256xf32>
    %361 = math.tanh %360 : vector<8x256xf32>
    %cst_170 = arith.constant 1.000000e+00 : f32
    %362 = vector.broadcast %cst_170 : f32 to vector<8x256xf32>
    %363 = arith.addf %362, %361 : vector<8x256xf32>
    %364 = arith.mulf %353, %363 : vector<8x256xf32>
    %365 = arith.truncf %364 : vector<8x256xf32> to vector<8x256xbf16>
    %c0_171 = arith.constant 0 : index
    %c0_172 = arith.constant 0 : index
    %366 = vector.load %arg13[%c0_171, %c0_172] : memref<256x128xbf16, #tpu.memory_space<vmem>>, vector<256x128xbf16>
    %cst_173 = arith.constant dense<0.000000e+00> : vector<8x128xf32>
    %367 = tpu.matmul %365, %366, %cst_173 {dimension_numbers = #tpu.dot_dimension_numbers<[1], [0], [0], [1], [0, 0, 1, 1], [], []>} : vector<8x256xbf16>, vector<256x128xbf16>, vector<8x128xf32> -> vector<8x128xf32>
    %c0_174 = arith.constant 0 : index
    %c0_175 = arith.constant 0 : index
    %368 = vector.load %arg14[%c0_174, %c0_175] : memref<1x128xf32, #tpu.memory_space<vmem>>, vector<1x128xf32>
    %369 = vector.broadcast %368 : vector<1x128xf32> to vector<8x128xf32>
    %370 = arith.addf %367, %369 : vector<8x128xf32>
    %c0_176 = arith.constant 0 : index
    %c0_177 = arith.constant 0 : index
    %c1280 = arith.constant 1280 : index
    %371 = vector.load %arg18[%c0_176, %c0_177, %c1280] : memref<1x8x1408xf32, #tpu.memory_space<vmem>>, vector<1x8x128xf32>
    %372 = vector.shape_cast %371 : vector<1x8x128xf32> to vector<8x128xf32>
    %373 = vector.shape_cast %370 : vector<8x128xf32> to vector<1x8x128xf32>
    tpu.vector_store %arg18[%c0_176, %c0_177, %c1280], %373 {strides = array<i32>} : memref<1x8x1408xf32, #tpu.memory_space<vmem>>, vector<1x8x128xf32>,
    return
  }
  func.func @transform_0(%arg0: i32, %arg1: i32) -> (i32, i32) {
    %c0_i32 = arith.constant 0 : i32
    %c0_i32_0 = arith.constant 0 : i32
    %c0_i32_1 = arith.constant 0 : i32
    return %c0_i32, %c0_i32_0 : i32, i32
  }
  func.func @transform_1(%arg0: i32, %arg1: i32) -> i32 {
    %c0_i32 = arith.constant 0 : i32
    %c0_i32_0 = arith.constant 0 : i32
    return %c0_i32 : i32
  }
  func.func @transform_2(%arg0: i32, %arg1: i32) -> (i32, i32, i32) {
    %c0_i32 = arith.constant 0 : i32
    %c0_i32_0 = arith.constant 0 : i32
    return %arg1, %arg0, %c0_i32 : i32, i32, i32
  }
  func.func @transform_3(%arg0: i32, %arg1: i32) -> (i32, i32) {
    %c0_i32 = arith.constant 0 : i32
    %c0_i32_0 = arith.constant 0 : i32
    %c0_i32_1 = arith.constant 0 : i32
    return %c0_i32, %c0_i32_0 : i32, i32
  }
  func.func @transform_4(%arg0: i32, %arg1: i32) -> (i32, i32) {
    %c0_i32 = arith.constant 0 : i32
    %c0_i32_0 = arith.constant 0 : i32
    %c0_i32_1 = arith.constant 0 : i32
    return %c0_i32, %c0_i32_0 : i32, i32
  }
  func.func @transform_5(%arg0: i32, %arg1: i32) -> (i32, i32, i32) {
    %c0_i32 = arith.constant 0 : i32
    %c0_i32_0 = arith.constant 0 : i32
    %c0_i32_1 = arith.constant 0 : i32
    %c0_i32_2 = arith.constant 0 : i32
    return %c0_i32, %c0_i32_0, %c0_i32_1 : i32, i32, i32
  }
  func.func @transform_6(%arg0: i32, %arg1: i32) -> (i32, i32, i32) {
    %c0_i32 = arith.constant 0 : i32
    %c0_i32_0 = arith.constant 0 : i32
    %c0_i32_1 = arith.constant 0 : i32
    %c0_i32_2 = arith.constant 0 : i32
    return %c0_i32, %c0_i32_0, %c0_i32_1 : i32, i32, i32
  }
  func.func @transform_7(%arg0: i32, %arg1: i32) -> (i32, i32) {
    %c0_i32 = arith.constant 0 : i32
    %c0_i32_0 = arith.constant 0 : i32
    %c0_i32_1 = arith.constant 0 : i32
    return %c0_i32, %c0_i32_0 : i32, i32
  }
  func.func @transform_8(%arg0: i32, %arg1: i32) -> (i32, i32) {
    %c0_i32 = arith.constant 0 : i32
    %c0_i32_0 = arith.constant 0 : i32
    %c0_i32_1 = arith.constant 0 : i32
    return %c0_i32, %c0_i32_0 : i32, i32
  }
  func.func @transform_9(%arg0: i32, %arg1: i32) -> (i32, i32) {
    %c0_i32 = arith.constant 0 : i32
    %c0_i32_0 = arith.constant 0 : i32
    %c0_i32_1 = arith.constant 0 : i32
    return %c0_i32, %c0_i32_0 : i32, i32
  }
  func.func @transform_10(%arg0: i32, %arg1: i32) -> (i32, i32) {
    %c0_i32 = arith.constant 0 : i32
    %c0_i32_0 = arith.constant 0 : i32
    %c0_i32_1 = arith.constant 0 : i32
    return %c0_i32, %c0_i32_0 : i32, i32
  }
  func.func @transform_11(%arg0: i32, %arg1: i32) -> (i32, i32) {
    %c0_i32 = arith.constant 0 : i32
    %c0_i32_0 = arith.constant 0 : i32
    %c0_i32_1 = arith.constant 0 : i32
    return %c0_i32, %c0_i32_0 : i32, i32
  }
  func.func @transform_12(%arg0: i32, %arg1: i32) -> (i32, i32) {
    %c0_i32 = arith.constant 0 : i32
    %c0_i32_0 = arith.constant 0 : i32
    %c0_i32_1 = arith.constant 0 : i32
    return %c0_i32, %c0_i32_0 : i32, i32
  }
  func.func @transform_13(%arg0: i32, %arg1: i32) -> (i32, i32, i32, i32) {
    %c0_i32 = arith.constant 0 : i32
    %c0_i32_0 = arith.constant 0 : i32
    %c0_i32_1 = arith.constant 0 : i32
    return %arg1, %c0_i32, %arg0, %c0_i32_0 : i32, i32, i32, i32
  }
  func.func @transform_14(%arg0: i32, %arg1: i32) -> (i32, i32, i32, i32) {
    %c0_i32 = arith.constant 0 : i32
    %c0_i32_0 = arith.constant 0 : i32
    %c0_i32_1 = arith.constant 0 : i32
    return %arg1, %c0_i32, %arg0, %c0_i32_0 : i32, i32, i32, i32
  }
  func.func @transform_15(%arg0: i32, %arg1: i32) -> (i32, i32, i32, i32) {
    %c0_i32 = arith.constant 0 : i32
    %c0_i32_0 = arith.constant 0 : i32
    %c0_i32_1 = arith.constant 0 : i32
    return %arg1, %c0_i32, %arg0, %c0_i32_0 : i32, i32, i32, i32
  }
  func.func @transform_16(%arg0: i32, %arg1: i32) -> (i32, i32, i32) {
    %c0_i32 = arith.constant 0 : i32
    %c0_i32_0 = arith.constant 0 : i32
    return %arg1, %arg0, %c0_i32 : i32, i32, i32
  }
}

</mosaic_0001>

<bundles_post_ra>
// kernel: transformer_block_forward.3
= control target key start
LH: loop header
LB: loop body
LE: loop exit
PB: predicated region body
PF: predicated region fallthrough
CT: control target
= control target key end

     0   :  { %s1155_s21 = smov 0   ;;  %s1157_s22 = smov 0   ;;  %s1260_s0 = inlined_call_operand.vmem [shape: bf16[2,4,8,32], index: 0, kind: input, shape index: {}]   ;;  %s1261_s1 = inlined_call_operand.vmem [shape: bf16[2,4,8,32], index: 1, kind: input, shape index: {}]   ;;  %s1262_s2 = inlined_call_operand.vmem [shape: bf16[2,4,8,32], index: 2, kind: input, shape index: {}]   ;;  %s1263_s3 = inlined_call_operand.vmem [shape: bf16[4,32,128], index: 3, kind: input, shape index: {}]   ;;  %s1264_s4 = inlined_call_operand.vmem [shape: f32[1,128], index: 4, kind: input, shape index: {}]   ;;  %s1265_s5 = inlined_call_operand.vmem [shape: f32[2,8,1408], index: 5, kind: input, shape index: {}, may-alias: {5,6}]   ;;  %s1266_s6 = inlined_call_operand.vmem [shape: f32[2,8,1408], index: 6, kind: output, shape index: {}, may-alias: {5,6}]  }
   0x1   :  { %s1159_s23 = smov 0   ;;  %s1161_s24 = smov 0  }
   0x2   :  { %s1163_s25 = smov 0  }
   0x3 LB: > { %s38_s5 = sadd.s32 1, %s1106_s23  ;;  %s42_s26 = sadd.s32 1, %s1110_s24  ;;  %s1114_s25 = sphi %s1163_s25, %s16_s25   ;;  %s1110_s24 = sphi %s1161_s24, %s1270_s24   ;;  %s1106_s23 = sphi %s1159_s23, %s1269_s23   ;;  %s1102_s22 = sphi %s1157_s22, %s1268_s22   ;;  %s1098_s21 = sphi %s1155_s21, %s1267_s21  }
   0x4   : > { %p40_p0 = scmp.ge.s32.totalorder %s38_s5, 2  ;;  %p973_p1 = scmp.ge.s32.totalorder %s1114_s25, 1 }
   0x5   : > { %p296_p2 = scmp.lt.s32.totalorder %s1114_s25, 9 }
   0x6   : > { %s1272_s5 = smov (%p40_p0, %s38_s5), 0  ;;  %s1274_s26 = smov (!%p40_p0, %s42_s26), %s1110_s24 }
   0x7   : > { %p297_p3 = pnand %p973_p1, %p296_p2  ;;  %p44_p4 = scmp.ge.s32.totalorder %s1274_s26, 4 }
   0x8   : > { %p369_p5 = scmp.lt.s32.totalorder (!%p297_p3), %s1098_s21, 1  ;;  %p371_p6 = scmp.lt.s32.totalorder (!%p297_p3), %s1102_s22, 3  ;;  %vm437_vm0 = vcmask (!%p297_p3), 261120   ;;  %v1116_v0 = vmov (!%p297_p3), 0.0   ;;  %vm1117_vm1 = vmmov (!%p297_p3), 0   ;;  %vm434_vm2 = vcmask (!%p297_p3), 7168  }
   0x9   : > { %s1276_s26 = smov (%p44_p4, %s1274_s26), 0  ;;  %300 = sbr.rel (%p297_p3) target bundleno = 1043 (0x413), region = 40 }
   0xa   : > { %1001 = vmatprep.subr.bf16.mxu0 (!%p297_p3), %v1116_v0  ;;  %438 = vst.msk [vmem:[#allocation4] sm:$0xff] (!%p297_p3), %vm437_vm0, %v1116_v0  ;;  %1003 = vmatprep.mubr.msk.bf16.mxu0 (!%p297_p3), %vm1117_vm1, %v1116_v0  ;;  %v1118_v4 = vmov (!%p297_p3), -inf   ;;  %v629_v5 = vlaneseq (!%p297_p3)  ;;  %vm636_vm4 = vcmask (!%p297_p3), 64512   ;;  %v1119_v14 = vmov (!%p297_p3), 0   ;;  %s415_s20 = sadd.s32 (!%p297_p3), 6, %s1102_s22 }
   0xb   : > { %1007 = vmatprep.subr.bf16.mxu1 (!%p297_p3), %v1116_v0  ;;  %1009 = vmatprep.mubr.msk.bf16.mxu1 (!%p297_p3), %vm1117_vm1, %v1116_v0  ;;  %435 = vst.msk [vmem:[#allocation2] sm:$0xff] (!%p297_p3), %vm434_vm2, %v1118_v4  ;;  %436 = vst.msk [vmem:[#allocation3] sm:$0xff] (!%p297_p3), %vm434_vm2, %v1116_v0  ;;  %vm672_vm5 = vcmask (!%p297_p3), 1043456   ;;  %p420_p7 = scmp.lt.s32.totalorder (!%p297_p3), %s415_s20, 10  ;;  %v987_v49 = vld [vmem:[%s1264_s4] ss:$0 sm:$0xff] (!%p297_p3) }
   0xc   : > { %v630_v6 = vshrl.u32 (!%p297_p3), %v629_v5, 7  ;;  %v632_v7 = vand.u32 (!%p297_p3), 127, %v629_v5  ;;  %1066 = vset.pattern.permute.xlu0 (!%p297_p3), %v1119_v14  ;;  %1067 = vset.pattern.permute.xlu1 (!%p297_p3), %v1119_v14 }
   0xe   : > { %vm633_vm3 = vcmp.gt.s32.totalorder (!%p297_p3), %v632_v7, %v630_v6 }
  0x10   : > { %s1278_s21 = smov (!%p369_p5, %s1098_s21), 1  ;;  %s1280_s20 = smov (!%p420_p7, %s415_s20), 10 }
  0x11   : > { %s372_s27 = scalar_select %p371_p6, %s1102_s22, 3  ;;  %v660_v37 = vld [vmem:[#allocation4] sm:$0xff] }
  0x12   : > { %s974_s28 = sshll.u32 %s1278_s21, 2  ;;  %v635_v15 = vld [vmem:[#allocation2] sm:$0xff]  ;;  %v652_v30 = vld [vmem:[#allocation3] sm:$0xff] }
  0x13   : > { %s377_s29 = sadd.s32 %s974_s28, %s372_s27  ;;  %s993_s30 = sshll.u32 %s372_s27, 4 }
  0x14   : > { %s1200_s7 = sshll.u32 %s377_s29, 2  ;;  %s1205_s10 = scalar_lea.vmem %s1263_s3, %s993_s30 }
  0x15   : > { %s392_s13 = scalar_lea.vmem %s1261_s1, %s1200_s7  ;;  %s379_s16 = scalar_lea.vmem %s1260_s0, %s1200_s7  ;;  %v1068_v29 = vld [vmem:[%s1205_s10] sm:$0xff]   ;;  %v1069_v36 = vld [vmem:[%s1205_s10 + $0x8] sm:$0xff]  }
  0x16   : > { %v581_v1 = vld [vmem:[%s392_s13] sm:$0xf]  ;;  %s407_s19 = scalar_lea.vmem %s1262_s2, %s1200_s7  ;;  %s1021_s27 = smul.u32 11, %s1278_s21 }
  0x17   : > { %v587_v2 = vsel %vm437_vm0, %v581_v1, 0  ;;  %v580_v3 = vld [vmem:[%s379_s16] sm:$0xf] }
  0x18   : > { %1002 = vmatpush3.bf16.xpose.msra.mxu0 %v587_v2  ;;  %v668_v19 = vld [vmem:[%s407_s19] sm:$0xf]  ;;  %s425_s28 = sadd.s32 %s1021_s27, %s1280_s20 }
  0x19   : > { %v674_v20 = vsel %vm672_vm5, %v668_v19, 0  ;;  %s982_s29 = sshll.u32 %s425_s28, 3 }
  0x1a   : > { %1008 = vmatpush3.bf16.msra.mxu1 %v674_v20  ;;  %s427_s10 = scalar_lea.vmem %s1266_s6, %s982_s29 }
  0x1b   : > { %1013 = vmatprep.subr.bf16.mxu1 %v1116_v0 }
  0x1f   : > { %1004 = vmatmul.mubr.msk.bf16.vlgmr.msra.gmra.mrb[0].mxu0 %vm437_vm0, %v580_v3 }
  0xf2   : > { %v623_v8 = vpop.f32.mrb[0].mxu0 }
  0xf3   : > { %v634_v9 = vsel %vm633_vm3, -inf, %v623_v8  ;;  %v1005_v10 = vpop.f32.mrb[1].mxu0 }
  0xf4   : > { %v626_v11 = vpop.f32.mrb[2].mxu0  ;;  %v637_v12 = vsel %vm636_vm4, %v634_v9, -inf }
  0xf5   : > { %638 = vmax.xlane.f32.xlu0 %v637_v12  ;;  %v1006_v13 = vpop.f32.mrb[3].mxu0 }
 0x182   : > { %v639_v16 = vpop.xlane.xlu0 %638 }
 0x183   : > { %v640_v17 = vmax.f32 %v635_v15, %v639_v16 }
 0x185   : > { %v641_v18 = vsub.f32 %v635_v15, %v640_v17  ;;  %718 = vst.msk [vmem:[#allocation2] sm:$0xff] %vm434_vm2, %v640_v17  ;;  %646 = vperm.xlu0 %1066, %v640_v17  }
 0x187   : > { %v642_v27 = vmul.f32 1.442695, %v641_v18 }
 0x204   : > { %v647_v21 = vpop.permute.xlu0 %646 }
 0x205   : > { %v649_v22 = vsub.f32 %v634_v9, %v647_v21 }
 0x207   : > { %v650_v23 = vmul.f32 1.442695, %v649_v22 }
 0x209   : > { %1070 = vpow2.f32 %v650_v23 }
 0x20a   : > { %1072 = vpow2.f32 %v642_v27 }
 0x213   : > { %v1071_v24 = vpop.eup %1070 }
 0x214   : > { %v654_v25 = vsel %vm636_vm4, %v1071_v24, 0.0  ;;  %v667_v26 = vpack.c.bf16 %v1071_v24, %v1071_v24  ;;  %v1073_v28 = vpop.eup %1072 }
 0x215   : > { %655 = vadd.xlane.f32.xlu1 %v654_v25  ;;  %v653_v31 = vmul.f32 %v1073_v28, %v652_v30 }
 0x216   : > { %1010 = vmatmul.mubr.msk.bf16.vlgmr.msra.gmra.mrb[0].mxu1 %vm636_vm4, %v667_v26 }
 0x217   : > { %1017 = vmatprep.mubr.msk.bf16.mxu1 %vm1117_vm1, %v1116_v0  ;;  %1014 = vmatpush3.bf16.msra.mxu1 %v1068_v29 }
 0x218   : > { %1015 = vmatprep.subr.bf16.mxu1 %v1116_v0 }
 0x21b   : > { %1016 = vmatpush3.bf16.msra.mxu1 %v1069_v36 }
 0x226   : > { %663 = vperm.xlu1 %1067, %v1073_v28  }
 0x2a2   : > { %v656_v32 = vpop.xlane.xlu1 %655 }
 0x2a3   : > { %v657_v33 = vadd.f32 %v656_v32, %v653_v31 }
 0x2a5   : > { %659 = vst.msk [vmem:[#allocation3] sm:$0xff] %vm434_vm2, %v657_v33 }
 0x2a6   : > { %v664_v38 = vpop.permute.xlu1 %663 }
 0x2a7   : > { %v666_v39 = vmul.f32 %v664_v38, %v660_v37 }
 0x2ac   : > { %v723_v34 = vld [vmem:[#allocation3] sm:$0xff] }
 0x2ad   : > { %1074 = vrcp.f32 %v723_v34 }
 0x2b7   : > { %v1075_v35 = vpop.eup %1074 }
 0x2b8   : > { %727 = vperm.xlu1 %1067, %v1075_v35  }
 0x2e9   : > { %v710_v40 = vpop.f32.mrb[0].mxu1 }
 0x2ea   : > { %v716_v41 = vadd.f32 %v710_v40, %v666_v39  ;;  %v1011_v42 = vpop.f32.mrb[1].mxu1 }
 0x2eb   : > { %v713_v43 = vpop.f32.mrb[2].mxu1 }
 0x2ec   : > { %717 = vst.msk [vmem:[#allocation4] sm:$0xff] %vm437_vm0, %v716_v41  ;;  %v1012_v44 = vpop.f32.mrb[3].mxu1 }
 0x2f3   : > { %v722_v45 = vld [vmem:[#allocation4] sm:$0xff] }
 0x337   : > { %v728_v46 = vpop.permute.xlu1 %727 }
 0x338   : > { %v730_v47 = vmul.f32 %v728_v46, %v722_v45 }
 0x33a   : > { %v731_v48 = vpack.c.bf16 %v730_v47, %v730_v47 }
 0x33c   : > { %1018 = vmatmul.mubr.msk.bf16.vlgmr.msra.gmra.mrb[4].mxu1 %vm437_vm0, %v731_v48 }
 0x40f   : > { %v793_v50 = vpop.f32.mrb[4].mxu1 }
 0x410   : > { %v794_v51 = vadd.f32 %v987_v49, %v793_v50  ;;  %v1019_v52 = vpop.f32.mrb[5].mxu1 }
 0x411   : > { %v796_v53 = vpop.f32.mrb[6].mxu1 }
 0x412   : > { %799 = vst [vmem:[%s427_s10] sm:$0xff] %v794_v51  ;;  %v1020_v54 = vpop.f32.mrb[7].mxu1 }
 0x413 PF: > { %s16_s25 = sadd.s32 1, %s1114_s25   ;;  %s1267_s21 = smov %s1106_s23 }
 0x414   : > { %p13_p8 = scmp.ge.s32.totalorder %s16_s25, 10   ;;  %s1268_s22 = smov %s1110_s24 }
 0x415   : > { %s1269_s23 = smov %s1272_s5  ;;  %s1270_s24 = smov %s1276_s26 }
 0x416   :  { %15 = sbr.rel (!%p13_p8) target bundleno = 3 (0x3), region = 95 }

// kernel: transformer_block_forward.2
= control target key start
LH: loop header
LB: loop body
LE: loop exit
PB: predicated region body
PF: predicated region fallthrough
CT: control target
= control target key end

     0   :  { %s3144_s0 = inlined_call_operand.vmem [shape: f32[6,4], index: 0, kind: input, shape index: {}]   ;;  %s3145_s1 = inlined_call_operand.vmem [shape: f32[6], index: 1, kind: input, shape index: {}]   ;;  %s3146_s2 = inlined_call_operand.vmem [shape: f32[2,8,768], index: 2, kind: input, shape index: {}]   ;;  %s3147_s3 = inlined_call_operand.vmem [shape: f32[1,128], index: 3, kind: input, shape index: {}]   ;;  %s3148_s4 = inlined_call_operand.vmem [shape: f32[1,128], index: 4, kind: input, shape index: {}]   ;;  %s3149_s5 = inlined_call_operand.vmem [shape: bf16[4,128,96], index: 5, kind: input, shape index: {}]   ;;  %s3150_s6 = inlined_call_operand.vmem [shape: f32[4,1,96], index: 6, kind: input, shape index: {}]   ;;  %s3151_s7 = inlined_call_operand.vmem [shape: f32[1,128], index: 7, kind: input, shape index: {}]   ;;  %s3152_s8 = inlined_call_operand.vmem [shape: f32[1,128], index: 8, kind: input, shape index: {}]   ;;  %s3153_s9 = inlined_call_operand.vmem [shape: bf16[128,256], index: 9, kind: input, shape index: {}]   ;;  %s3154_s10 = inlined_call_operand.vmem [shape: f32[1,256], index: 10, kind: input, shape index: {}]   ;;  %s3155_s11 = inlined_call_operand.vmem [shape: bf16[256,128], index: 11, kind: input, shape index: {}]   ;;  %s3156_s12 = inlined_call_operand.vmem [shape: f32[1,128], index: 12, kind: input, shape index: {}]   ;;  %s3157_s13 = inlined_call_operand.vmem [shape: bf16[2,4,8,32], index: 13, kind: output, shape index: {0}]   ;;  %s3158_s14 = inlined_call_operand.vmem [shape: bf16[2,4,8,32], index: 14, kind: output, shape index: {1}]   ;;  %s3159_s15 = inlined_call_operand.vmem [shape: bf16[2,4,8,32], index: 15, kind: output, shape index: {2}]   ;;  %s3160_s16 = inlined_call_operand.vmem [shape: f32[2,8,1408], index: 16, kind: output, shape index: {3}]  }
   0x1   :  { %3165 = sst [smem:[#allocation10_spill]] %s3144_s0 }
   0x2   :  { %3166 = sst [smem:[#allocation11_spill]] %s3145_s1 }
   0x3   :  { %22 = vsyncpa [#allocation3], 0 }
   0x4   :  { %23 = vsyncpa [#allocation5], 0  ;;  %s2607_s21 = smov 0   ;;  %s2609_s22 = smov 0  }
   0x5   :  { %s2611_s23 = smov 0  }
   0x6 LB: > { %3167 = sst [smem:[#allocation8_spill]] %s2509_s22  ;;  %s1986_s24 = sadd.s32 4294967295, %s2513_s23   ;;  %s2513_s23 = sphi %s2611_s23, %s29_s23   ;;  %s2509_s22 = sphi %s2609_s22, %s3177_s22   ;;  %s2505_s21 = sphi %s2607_s21, %s3176_s21  }
   0x7   : > { %s38_s25 = sadd.s32 1, %s2509_s22  ;;  %p1988_p1 = scmp.ge.s32.totalorder %s2513_s23, 1 }
   0x8   : > { %p39_p0 = scmp.ge.s32.totalorder %s38_s25, 2  ;;  %p438_p2 = scmp.lt.s32.totalorder %s2513_s23, 3 }
   0x9   : > { %p2632_p4 = scmp.eq.s32.totalorder %s1986_s24, 0  ;;  %s3171_s30 = sld [smem:[#allocation10_spill]] }
   0xa   : > { %s3179_s25 = smov (%p39_p0, %s38_s25), 0  ;;  %p2628_p3 = pnand %p1988_p1, %p438_p2 }
   0xb   : > { %3168 = sst [smem:[#allocation9_spill]] %s3179_s25  ;;  %s3172_s1 = sld [smem:[#allocation11_spill]] }
   0xc   : > { %s3169_s26 = scalar_select %p2628_p3, 1, 0 }
   0xd   : > { %s3170_s27 = scalar_select %p2632_p4, 1, 0 }
   0xe   : > { %p2325_p5 = pneg %p2628_p3 }
   0xf   : > { %s451_s0 = sshll.u32 %s3171_s30, 4  ;;  %s452_s0 = int_to_ptr.vmem [resolvable:$true] %s451_s0 }
  0x10   : > { %p2646_p6 = pnand %p2632_p4, %p2325_p5  ;;  %s2453_s24 = scalar_lea.vmem %s452_s0, 128 }
  0x11   : > { %s462_s19 = sshll.u32 %s3172_s1, 4  ;;  %p2454_p7 = scmp.ne.s32.totalorder %s452_s0, %s2453_s24  ;;  %s463_s19 = int_to_ptr.vmem [resolvable:$true] %s462_s19 }
  0x12   : > { %p2455_p8 = pneg %p2646_p6  ;;  %p2461_p11 = scmp.lt.s32.totalorder %s452_s0, %s452_s0 }
  0x13   : > { %p2462_p12 = scmp.lt.s32.totalorder %s2453_s24, %s2453_s24 }
  0x14   : > { %p2456_p9 = pnand %p2455_p8, %p2454_p7 }
  0x15   : > { %p2463_p13 = por %p2462_p12, %p2461_p11 }
  0x16   : > { %p2457_p10 = pneg %p2456_p9 }
  0x18   : > { %p2464_p0 = pnand %p2463_p13, %p2457_p10 }
  0x1a   : > { %2467 = shalt.err (!%p2464_p0)
}
  0x1b   : > { %s2515_s28 = smov [#allocation2]   ;;  %s2468_s29 = scalar_lea.vmem %s463_s19, 16 }
  0x1c   : > { %2328 = dma.vmem_to_smem (!%p2646_p6), %s452_s0, 128, %s2515_s28, [#allocation3]  }
  0x1d   : > { %p2469_p1 = scmp.ne.s32.totalorder %s463_s19, %s2468_s29  ;;  %p2476_p4 = scmp.lt.s32.totalorder %s463_s19, %s463_s19 }
  0x1e   : > { %p2477_p3 = scmp.lt.s32.totalorder %s2468_s29, %s2468_s29 }
  0x1f   : > { %p2471_p2 = pnand %p2469_p1, %p2455_p8 }
  0x20   : > { %p2478_p7 = por %p2477_p3, %p2476_p4 }
  0x21   : > { %p2472_p5 = pneg %p2471_p2 }
  0x23   : > { %p2479_p9 = pnand %p2478_p7, %p2472_p5 }
  0x25   : > { %2482 = shalt.err (!%p2479_p9)
}
  0x26   : > { %s2516_s30 = smov [#allocation4]   ;;  %p3174_p10 = scmp.ne.s32.totalorder %s3169_s26, 0 }
  0x27   : > { %2331 = dma.vmem_to_smem (!%p2646_p6), %s463_s19, 16, %s2516_s30, [#allocation5]  }
  0x28   : > { %517 = sbr.rel (%p3174_p10) target bundleno = 910 (0x38e), region = 72  ;;  %p3175_p11 = scmp.ne.s32.totalorder (!%p3174_p10), %s3170_s27, 0 }
  0x2f   : > { %2496 = dma.done.wait (%p3175_p11), [#allocation3], 128  }
  0x30   : > { %2498 = vsyncadd (%p3175_p11), [#allocation3], 4294967168 }
  0x31   : > { %2500 = dma.done.wait (%p3175_p11), [#allocation5], 16  }
  0x32   : > { %2502 = vsyncadd (%p3175_p11), [#allocation5], 4294967280 }
  0x33   : > { %527 = sfence }
  0x34   : > { %p604_p3 = scmp.lt.s32.totalorder %s2505_s21, 1  ;;  %s661_s0 = sld [smem:[#allocation2]]  ;;  %v2367_v57 = vld [vmem:[%s3149_s5] sm:$0xff]   ;;  %v2517_v58 = vmov 0.0   ;;  %v2368_v59 = vld [vmem:[%s3149_s5 + $0x8] sm:$0xff]   ;;  %v2369_v60 = vld [vmem:[%s3149_s5 + $0x10] sm:$0xff]  }
  0x35   : > { %s2003_s17 = sld [smem:[#allocation2 + $0x80]]  ;;  %s2675_s29 = sld [smem:[#allocation4 + $0x1]]  ;;  %2235 = vmatprep.subr.bf16.mxu0 %v2517_v58  ;;  %2255 = vmatprep.subr.bf16.mxu1 %v2517_v58  ;;  %vm2518_vm0 = vmmov 0   ;;  %vm823_vm1 = vcmask 257024  }
  0x36   : > { %s2004_s26 = sld [smem:[#allocation2 + $0x100]]  ;;  %s3181_s21 = smov (!%p604_p3, %s2505_s21), 1  ;;  %2236 = vmatpush3.bf16.msra.mxu0 %v2367_v57  ;;  %2251 = vmatprep.mubr.msk.bf16.mxu0 %vm2518_vm0, %v2517_v58 }
  0x37   : > { %s2005_s18 = sld [smem:[#allocation2 + $0x180]]  ;;  %s2315_s20 = smul.u32 48, %s3181_s21  ;;  %2237 = vmatprep.subr.bf16.mxu0 %v2517_v58  ;;  %2271 = vmatprep.mubr.msk.bf16.mxu1 %vm2518_vm0, %v2517_v58 }
  0x38   : > { %s2006_s19 = sld [smem:[#allocation2 + $0x200]]  ;;  %s2680_s25 = sld [smem:[#allocation4 + $0x2]] }
  0x39   : > { %s2671_s24 = sld [smem:[#allocation2 + $0x280]]  ;;  %s612_s1 = scalar_lea.vmem %s3146_s2, %s2315_s20 }
  0x3a   : > { %s2673_s28 = sld [smem:[#allocation4]]  ;;  %v662_v0 = vstv %s661_s0  ;;  %v2682_v1 = vld [vmem:[%s612_s1] sm:$0xff]  ;;  %v2684_v2 = vld [vmem:[%s612_s1 + $0x8] sm:$0xff]  ;;  %v2686_v3 = vld [vmem:[%s612_s1 + $0x10] sm:$0xff]  ;;  %s2688_s22 = sld [smem:[#allocation4 + $0x3]]  ;;  %2238 = vmatpush3.bf16.msra.mxu0 %v2368_v59 }
  0x3b   : > { %v665_v4 = vstv %s2003_s17  ;;  %v2690_v5 = vld [vmem:[%s612_s1 + $0x18] sm:$0xff]  ;;  %v2692_v6 = vld [vmem:[%s612_s1 + $0x20] sm:$0xff]  ;;  %v2694_v7 = vld [vmem:[%s612_s1 + $0x28] sm:$0xff]  ;;  %v663_v8 = vmul.f32 %v662_v0, %v2682_v1  ;;  %s2698_s0 = sld [smem:[#allocation4 + $0x4]]  ;;  %s2132_s17 = sld [smem:[#allocation4 + $0x5]]  ;;  %2239 = vmatprep.subr.bf16.mxu0 %v2517_v58 }
  0x3c   : > { %v666_v9 = vmul.f32 %v665_v4, %v2684_v2  ;;  %v669_v10 = vstv %s2004_s26  ;;  %s2056_s20 = sld [smem:[#allocation2 + $0x2]]  ;;  %v1340_v19 = vstv %s2675_s29 }
  0x3d   : > { %v670_v11 = vmul.f32 %v669_v10, %v2686_v3  ;;  %v673_v12 = vstv %s2005_s18  ;;  %s2703_s1 = sld [smem:[#allocation2 + $0x82]]  ;;  %v1341_v22 = vmul.f32 %v1340_v19, %v2684_v2 }
  0x3e   : > { %v677_v13 = vstv %s2006_s19  ;;  %v667_v14 = vadd.f32 %v666_v9, %v663_v8  ;;  %v674_v15 = vmul.f32 %v673_v12, %v2690_v5  ;;  %s2705_s27 = sld [smem:[#allocation2 + $0x102]]  ;;  %v1344_v23 = vstv %s2680_s25  ;;  %2240 = vmatpush3.bf16.msra.mxu0 %v2369_v60  ;;  %s2097_s25 = sld [smem:[#allocation2 + $0x283]] }
  0x3f   : > { %v681_v16 = vstv %s2671_s24  ;;  %v678_v17 = vmul.f32 %v677_v13, %v2692_v6  ;;  %s2710_s26 = sld [smem:[#allocation2 + $0x182]]  ;;  %v1345_v25 = vmul.f32 %v1344_v23, %v2686_v3  ;;  %2241 = vmatprep.subr.bf16.mxu0 %v2517_v58  ;;  %s2024_s24 = sld [smem:[#allocation2 + $0x201]] }
  0x40   : > { %v1337_v18 = vstv %s2673_s28  ;;  %s2712_s18 = sld [smem:[#allocation2 + $0x202]]  ;;  %v671_v20 = vadd.f32 %v670_v11, %v667_v14  ;;  %v682_v24 = vmul.f32 %v681_v16, %v2694_v7  ;;  %v1348_v26 = vstv %s2688_s22  ;;  %s2023_s22 = sld [smem:[#allocation2 + $0x181]] }
  0x41   : > { %v1338_v21 = vmul.f32 %v1337_v18, %v2682_v1  ;;  %s2717_s19 = sld [smem:[#allocation2 + $0x282]]  ;;  %v1349_v29 = vmul.f32 %v1348_v26, %v2690_v5  ;;  %v1352_v30 = vstv %s2698_s0  ;;  %v1356_v31 = vstv %s2132_s17  ;;  %s2092_s0 = sld [smem:[#allocation2 + $0x3]] }
  0x42   : > { %v675_v27 = vadd.f32 %v674_v15, %v671_v20  ;;  %v1003_v32 = vstv %s2056_s20  ;;  %v1353_v35 = vmul.f32 %v1352_v30, %v2692_v6  ;;  %v1357_v37 = vmul.f32 %v1356_v31, %v2694_v7  ;;  %s2093_s17 = sld [smem:[#allocation2 + $0x83]]  ;;  %s2025_s28 = sld [smem:[#allocation2 + $0x281]] }
  0x43   : > { %v1342_v28 = vadd.f32 %v1341_v22, %v1338_v21  ;;  %v1004_v36 = vmul.f32 %v1003_v32, %v2682_v1  ;;  %v1006_v38 = vstv %s2703_s1  ;;  %s2094_s20 = sld [smem:[#allocation2 + $0x103]]  ;;  %s2020_s1 = sld [smem:[#allocation2 + $0x1]] }
  0x44   : > { %v679_v33 = vadd.f32 %v678_v17, %v675_v27  ;;  %v1010_v39 = vstv %s2705_s27  ;;  %v1007_v43 = vmul.f32 %v1006_v38, %v2684_v2  ;;  %s2021_s27 = sld [smem:[#allocation2 + $0x81]] }
  0x45   : > { %v1346_v34 = vadd.f32 %v1345_v25, %v1342_v28  ;;  %v1014_v40 = vstv %s2710_s26  ;;  %v1011_v44 = vmul.f32 %v1010_v39, %v2686_v3  ;;  %s2095_s26 = sld [smem:[#allocation2 + $0x183]]  ;;  %v1188_v28 = vstv %s2097_s25 }
  0x46   : > { %v2730_v41 = vadd.f32 %v682_v24, %v679_v33  ;;  %v1018_v45 = vstv %s2712_s18  ;;  %v1008_v47 = vadd.f32 %v1007_v43, %v1004_v36  ;;  %v1015_v48 = vmul.f32 %v1014_v40, %v2690_v5  ;;  %s2022_s18 = sld [smem:[#allocation2 + $0x101]] }
  0x47   : > { %v1350_v42 = vadd.f32 %v1349_v29, %v1346_v34  ;;  %v1022_v49 = vstv %s2717_s19  ;;  %v1019_v52 = vmul.f32 %v1018_v45, %v2692_v6  ;;  %v1169_v61 = vstv %s2092_s0  ;;  %s2096_s19 = sld [smem:[#allocation2 + $0x203]] }
  0x48   : > { %684 = vadd.xlane.f32.xlu0 %v2730_v41  ;;  %v1012_v51 = vadd.f32 %v1011_v44, %v1008_v47  ;;  %v1023_v54 = vmul.f32 %v1022_v49, %v2694_v7  ;;  %v1172_v62 = vstv %s2093_s17  ;;  %v1170_v63 = vmul.f32 %v1169_v61, %v2682_v1  ;;  %v2370_v49 = vld [vmem:[%s3149_s5 + $0x18] sm:$0xff]  }
  0x49   : > { %v1354_v46 = vadd.f32 %v1353_v35, %v1350_v42  ;;  %v1173_v0 = vmul.f32 %v1172_v62, %v2684_v2  ;;  %v1176_v4 = vstv %s2094_s20  ;;  %v837_v8 = vstv %s2020_s1  ;;  %2242 = vmatpush3.bf16.msra.mxu0 %v2370_v49  ;;  %v2389_v49 = vld [vmem:[%s3153_s9 + $0x20] ss:$8 sps:$4 sm:$0xff]  }
  0x4a   : > { %v1016_v53 = vadd.f32 %v1015_v48, %v1012_v51  ;;  %v840_v9 = vstv %s2021_s27  ;;  %v1177_v11 = vmul.f32 %v1176_v4, %v2686_v3  ;;  %v838_v13 = vmul.f32 %v837_v8, %v2682_v1  ;;  %2243 = vmatprep.subr.bf16.mxu0 %v2517_v58  ;;  %v2372_v51 = vld [vmem:[%s3149_s5 + $0x28] sm:$0xff]   ;;  %s2520_s27 = smov 64  }
  0x4b   : > { %v2738_v50 = vadd.f32 %v1357_v37, %v1354_v46  ;;  %v1174_v10 = vadd.f32 %v1173_v0, %v1170_v63  ;;  %v1180_v12 = vstv %s2095_s26  ;;  %v841_v14 = vmul.f32 %v840_v9, %v2684_v2  ;;  %s2521_s26 = smov 96  }
  0x4c   : > { %v1020_v55 = vadd.f32 %v1019_v52, %v1016_v53  ;;  %v844_v15 = vstv %s2022_s18  ;;  %v1181_v17 = vmul.f32 %v1180_v12, %v2690_v5  ;;  %v848_v23 = vstv %s2023_s22  ;;  %v2373_v52 = vld [vmem:[%s3149_s5 + $0x30] sm:$0xff]   ;;  %v2374_v53 = vld [vmem:[%s3149_s5 + $0x38] sm:$0xff]   ;;  %s3031_s18 = sshll.u32 %s3181_s21, 4 }
  0x4d   : > { %1359 = vadd.xlane.f32.xlu1 %v2738_v50  ;;  %v1178_v16 = vadd.f32 %v1177_v11, %v1174_v10  ;;  %v1184_v19 = vstv %s2096_s19  ;;  %v842_v21 = vadd.f32 %v841_v14, %v838_v13  ;;  %v845_v22 = vmul.f32 %v844_v15, %v2686_v3  ;;  %v2832_v12 = vld [vmem:[%s3147_s3] ss:$0 sm:$0xff]  ;;  %s3043_s30 = scalar_lea.vmem %s3157_s13, %s3031_s18  ;;  %s3074_s19 = scalar_lea.vmem %s3159_s15, %s3031_s18 }
  0x4e   : > { %v2743_v56 = vadd.f32 %v1023_v54, %v1020_v55  ;;  %v1185_v26 = vmul.f32 %v1184_v19, %v2692_v6  ;;  %v849_v32 = vmul.f32 %v848_v23, %v2690_v5  ;;  %v852_v33 = vstv %s2024_s24  ;;  %v2407_v54 = vld [vmem:[%s3149_s5 + $0x40] sm:$0xff]   ;;  %v2408_v55 = vld [vmem:[%s3149_s5 + $0x48] sm:$0xff]   ;;  %s3080_s24 = scalar_lea.vmem %s3158_s14, %s3031_s18  ;;  %s2316_s18 = smul.u32 88, %s3181_s21 }
  0x4f   : > { %v1182_v25 = vadd.f32 %v1181_v17, %v1178_v16  ;;  %v846_v31 = vadd.f32 %v845_v22, %v842_v21  ;;  %v1189_v36 = vmul.f32 %v1188_v28, %v2694_v7  ;;  %v853_v39 = vmul.f32 %v852_v33, %v2692_v6  ;;  %2256 = vmatpush3.bf16.msra.mxu1 %v2407_v54  ;;  %v2840_v15 = vld [vmem:[%s3148_s4] ss:$0 sm:$0xff]  ;;  %v2376_v23 = vld [vmem:[%s3149_s5 + $0x88] sm:$0xff]   ;;  %v2381_v33 = vld [vmem:[%s3149_s5 + $0xb0] sm:$0xff]  }
  0x50   : > { %1025 = vadd.xlane.f32.xlu0 %v2743_v56  ;;  %2257 = vmatprep.subr.bf16.mxu1 %v2517_v58  ;;  %v2400_v54 = vld [vmem:[%s3153_s9 + $0x54] ss:$8 sps:$4 sm:$0xff]   ;;  %s3100_s20 = scalar_lea.vmem %s3160_s16, %s2316_s18 }
  0x51   : > { %v1186_v35 = vadd.f32 %v1185_v26, %v1182_v25  ;;  %v850_v38 = vadd.f32 %v849_v32, %v846_v31  ;;  %v2378_v25 = vld [vmem:[%s3149_s5 + $0x98] sm:$0xff]   ;;  %v2412_v32 = vld [vmem:[%s3149_s5 + $0x68] sm:$0xff]   ;;  %653 = vst [vmem:[%s3100_s20] sm:$0xff] %v2682_v1  ;;  %654 = vst [vmem:[%s3100_s20 + $0x8] sm:$0xff] %v2684_v2 }
  0x52   : > { %v2410_v26 = vld [vmem:[%s3149_s5 + $0x58] sm:$0xff]   ;;  %655 = vst [vmem:[%s3100_s20 + $0x10] sm:$0xff] %v2686_v3  ;;  %656 = vst [vmem:[%s3100_s20 + $0x18] sm:$0xff] %v2690_v5 }
  0x53   : > { %v1190_v43 = vadd.f32 %v1189_v36, %v1186_v35  ;;  %v854_v45 = vadd.f32 %v853_v39, %v850_v38  ;;  %2258 = vmatpush3.bf16.msra.mxu1 %v2408_v55  ;;  %v2413_v36 = vld [vmem:[%s3149_s5 + $0x70] sm:$0xff]   ;;  %v2385_v39 = vld [vmem:[%s3153_s9 + $0x4] ss:$8 sps:$4 sm:$0xff]   ;;  %657 = vst [vmem:[%s3100_s20 + $0x20] sm:$0xff] %v2692_v6  ;;  %658 = vst [vmem:[%s3100_s20 + $0x28] sm:$0xff] %v2694_v7 }
  0x54   : > { %2259 = vmatprep.subr.bf16.mxu1 %v2517_v58 }
  0xd5   : > { %v685_v18 = vpop.xlane.xlu0 %684 }
  0xd6   : > { %v687_v20 = vmul.f32 0.0078125, %v685_v18 }
  0xd8   : > { %v2768_v24 = vsub.f32 %v2730_v41, %v687_v20  ;;  %v856_v41 = vstv %s2025_s28  ;;  %v2375_v20 = vld [vmem:[%s3149_s5 + $0x80] sm:$0xff]  }
  0xd9   : > { %v857_v46 = vmul.f32 %v856_v41, %v2694_v7 }
  0xda   : > { %v1360_v27 = vpop.xlane.xlu1 %1359  ;;  %v689_v30 = vmul.f32 %v2768_v24, %v2768_v24 }
  0xdb   : > { %v1361_v29 = vmul.f32 0.0078125, %v1360_v27  ;;  %v858_v48 = vadd.f32 %v857_v46, %v854_v45  ;;  %v2379_v27 = vld [vmem:[%s3149_s5 + $0xa0] sm:$0xff]   ;;  %v2386_v46 = vld [vmem:[%s3153_s9 + $0x10] ss:$8 sps:$4 sm:$0xff]  }
  0xdc   : > { %690 = vadd.xlane.f32.xlu1 %v689_v30  ;;  %v2380_v30 = vld [vmem:[%s3149_s5 + $0xa8] sm:$0xff]  }
  0xdd   : > { %v2775_v34 = vsub.f32 %v2738_v50, %v1361_v29  ;;  %v1026_v40 = vpop.xlane.xlu0 %1025  ;;  %v2371_v50 = vld [vmem:[%s3149_s5 + $0x20] sm:$0xff]  }
  0xde   : > { %v1027_v42 = vmul.f32 0.0078125, %v1026_v40  ;;  %2244 = vmatpush3.bf16.msra.mxu0 %v2371_v50  ;;  %v2411_v29 = vld [vmem:[%s3149_s5 + $0x60] sm:$0xff]   ;;  %v2414_v40 = vld [vmem:[%s3149_s5 + $0x78] sm:$0xff]  }
  0xdf   : > { %v1363_v37 = vmul.f32 %v2775_v34, %v2775_v34  ;;  %2245 = vmatprep.subr.bf16.mxu0 %v2517_v58  ;;  %v2394_v50 = vld [vmem:[%s3153_s9 + $0x34] ss:$8 sps:$4 sm:$0xff]  }
  0xe0   : > { %v2782_v44 = vsub.f32 %v2743_v56, %v1027_v42  ;;  %v2409_v56 = vld [vmem:[%s3149_s5 + $0x50] sm:$0xff]   ;;  %v2383_v42 = vld [vmem:[%s3153_s9] ss:$8 sps:$4 sm:$0xff]  }
  0xe1   : > { %1364 = vadd.xlane.f32.xlu1 %v1363_v37  ;;  %2260 = vmatpush3.bf16.msra.mxu1 %v2409_v56  ;;  %v2382_v37 = vld [vmem:[%s3149_s5 + $0xb8] sm:$0xff]  }
  0xe2   : > { %v1029_v47 = vmul.f32 %v2782_v44, %v2782_v44  ;;  %2246 = vmatpush3.bf16.msra.mxu0 %v2372_v51  ;;  %2261 = vmatprep.subr.bf16.mxu1 %v2517_v58  ;;  %v2392_v51 = vld [vmem:[%s3153_s9 + $0x30] ss:$8 sps:$4 sm:$0xff]  }
  0xe3   : > { %2247 = vmatprep.subr.bf16.mxu0 %v2517_v58  ;;  %v2398_v56 = vld [vmem:[%s3153_s9 + $0x50] ss:$8 sps:$4 sm:$0xff]  }
  0xe4   : > { %1030 = vadd.xlane.f32.xlu0 %v1029_v47  ;;  %v2519_v47 = vmov 0  }
  0xe5   : > { %1191 = vadd.xlane.f32.xlu1 %v1190_v43  ;;  %2262 = vmatpush3.bf16.msra.mxu1 %v2410_v26  ;;  %v2418_v26 = vld [vmem:[%s3149_s5 + $0xd8] sm:$0xff]  }
  0xe6   : > { %2248 = vmatpush3.bf16.msra.mxu0 %v2373_v52  ;;  %2263 = vmatprep.subr.bf16.mxu1 %v2517_v58  ;;  %v2397_v52 = vld [vmem:[%s3153_s9 + $0x44] ss:$8 sps:$4 sm:$0xff]  }
  0xe7   : > { %2249 = vmatprep.subr.bf16.mxu0 %v2517_v58 }
  0xe8   : > { %859 = vadd.xlane.f32.xlu0 %v858_v48 }
  0xe9   : > { %2264 = vmatpush3.bf16.msra.mxu1 %v2411_v29  ;;  %v2420_v29 = vld [vmem:[%s3149_s5 + $0xe8] sm:$0xff]  }
  0xea   : > { %2250 = vmatpush3.bf16.msra.mxu0 %v2374_v53  ;;  %2265 = vmatprep.subr.bf16.mxu1 %v2517_v58  ;;  %v2395_v53 = vld [vmem:[%s3153_s9 + $0x40] ss:$8 sps:$4 sm:$0xff]  }
  0xeb   : > { %2275 = vmatprep.subr.bf16.mxu0 %v2517_v58 }
  0xed   : > { %2266 = vmatpush3.bf16.msra.mxu1 %v2412_v32 }
  0xee   : > { %2267 = vmatprep.subr.bf16.mxu1 %v2517_v58 }
  0xf1   : > { %2268 = vmatpush3.bf16.msra.mxu1 %v2413_v36  ;;  %v2424_v36 = vld [vmem:[%s3155_s11] sm:$0xff]  }
  0xf2   : > { %2269 = vmatprep.subr.bf16.mxu1 %v2517_v58 }
  0xf5   : > { %2270 = vmatpush3.bf16.msra.mxu1 %v2414_v40  ;;  %v2430_v40 = vld [vmem:[%s3155_s11 + $0x18] sm:$0xff]  }
  0xf6   : > { %2295 = vmatprep.subr.bf16.mxu1 %v2517_v58 }
 0x169   : > { %v691_v57 = vpop.xlane.xlu1 %690 }
 0x16a   : > { %v692_v59 = vmul.f32 0.0078125, %v691_v57  ;;  %v2403_v57 = vld [vmem:[%s3153_s9 + $0x64] ss:$8 sps:$4 sm:$0xff]  }
 0x16c   : > { %v693_v60 = vadd.f32 1e-05, %v692_v59 }
 0x16e   : > { %v2823_v61 = vpop.xlane.xlu1 %1364  ;;  %2439 = vrsqrt.f32 %v693_v60  ;;  %v2133_v60 = vld [vmem:[%s3151_s7] ss:$0 sm:$0xff] }
 0x16f   : > { %v1366_v41 = vmul.f32 0.0078125, %v2823_v61  ;;  %v2401_v61 = vld [vmem:[%s3153_s9 + $0x60] ss:$8 sps:$4 sm:$0xff]  }
 0x171   : > { %v1031_v0 = vpop.xlane.xlu0 %1030  ;;  %v1367_v45 = vadd.f32 1e-05, %v1366_v41  ;;  %v2431_v41 = vld [vmem:[%s3155_s11 + $0x60] sm:$0xff]  }
 0x172   : > { %v1192_v62 = vpop.xlane.xlu1 %1191  ;;  %v1032_v19 = vmul.f32 0.0078125, %v1031_v0  ;;  %v2134_v0 = vld [vmem:[%s3152_s8] ss:$0 sm:$0xff] }
 0x173   : > { %v1193_v63 = vmul.f32 0.0078125, %v1192_v62  ;;  %v2406_v62 = vld [vmem:[%s3153_s9 + $0x74] ss:$8 sps:$4 sm:$0xff]  }
 0x174   : > { %v1033_v22 = vadd.f32 1e-05, %v1032_v19 }
 0x175   : > { %v2825_v4 = vsub.f32 %v1190_v43, %v1193_v63  ;;  %v860_v9 = vpop.xlane.xlu0 %859 }
 0x176   : > { %v861_v11 = vmul.f32 0.0078125, %v860_v9  ;;  %2441 = vrsqrt.f32 %v1033_v22  ;;  %v2415_v22 = vld [vmem:[%s3149_s5 + $0xc0] sm:$0xff]  }
 0x177   : > { %v1195_v8 = vmul.f32 %v2825_v4, %v2825_v4  ;;  %2443 = vrsqrt.f32 %v1367_v45 }
 0x178   : > { %v2440_v10 = vpop.eup %2439  ;;  %v2835_v14 = vsub.f32 %v858_v48, %v861_v11  ;;  %v2391_v48 = vld [vmem:[%s3153_s9 + $0x24] ss:$8 sps:$4 sm:$0xff]  }
 0x179   : > { %1196 = vadd.xlane.f32.xlu1 %v1195_v8  ;;  %v695_v13 = vmul.f32 %v2440_v10, %v2768_v24  ;;  %v2377_v24 = vld [vmem:[%s3149_s5 + $0x90] sm:$0xff]  }
 0x17a   : > { %v863_v17 = vmul.f32 %v2835_v14, %v2835_v14 }
 0x17b   : > { %v702_v16 = vmul.f32 %v2832_v12, %v695_v13 }
 0x17c   : > { %864 = vadd.xlane.f32.xlu0 %v863_v17 }
 0x17d   : > { %v709_v18 = vadd.f32 %v2840_v15, %v702_v16 }
 0x17f   : > { %v710_v21 = vpack.c.bf16 %v709_v18, %v709_v18 }
 0x180   : > { %v2442_v28 = vpop.eup %2441 }
 0x181   : > { %2252 = vmatmul.mubr.bf16.vlgmr.msra.gmra.mrb[0].mxu0 %v710_v21  ;;  %v1035_v31 = vmul.f32 %v2442_v28, %v2782_v44  ;;  %v2388_v44 = vld [vmem:[%s3153_s9 + $0x14] ss:$8 sps:$4 sm:$0xff]   ;;  %v2444_v55 = vpop.eup %2443 }
 0x182   : > { %2276 = vmatpush3.bf16.msra.mxu0 %v2375_v20  ;;  %2291 = vmatprep.mubr.msk.bf16.mxu0 %vm2518_vm0, %v2517_v58  ;;  %v1369_v59 = vmul.f32 %v2444_v55, %v2775_v34  ;;  %v2404_v34 = vld [vmem:[%s3153_s9 + $0x70] ss:$8 sps:$4 sm:$0xff]  }
 0x183   : > { %2277 = vmatprep.subr.bf16.mxu0 %v2517_v58  ;;  %v1036_v35 = vmul.f32 %v2832_v12, %v1035_v31  ;;  %v2421_v31 = vld [vmem:[%s3149_s5 + $0xf0] sm:$0xff]   ;;  %v2438_v55 = vld [vmem:[%s3155_s11 + $0x38] sm:$0xff]  }
 0x184   : > { %v1376_v63 = vmul.f32 %v2133_v60, %v1369_v59 }
 0x185   : > { %v1037_v38 = vadd.f32 %v2840_v15, %v1036_v35 }
 0x186   : > { %2278 = vmatpush3.bf16.msra.mxu0 %v2376_v23  ;;  %v1383_v8 = vadd.f32 %v2134_v0, %v1376_v63  ;;  %v1403_v0 = vlaneseq }
 0x187   : > { %2279 = vmatprep.subr.bf16.mxu0 %v2517_v58  ;;  %v1038_v43 = vpack.c.bf16 %v1037_v38, %v1037_v38  ;;  %v2428_v38 = vld [vmem:[%s3155_s11 + $0x10] sm:$0xff]  }
 0x188   : > { %v1384_v9 = vpack.c.bf16 %v1383_v8, %v1383_v8 }
 0x18a   : > { %2280 = vmatpush3.bf16.msra.mxu0 %v2377_v24 }
 0x18b   : > { %2281 = vmatprep.subr.bf16.mxu0 %v2517_v58 }
 0x18e   : > { %2282 = vmatpush3.bf16.msra.mxu0 %v2378_v25  ;;  %v2416_v25 = vld [vmem:[%s3149_s5 + $0xc8] sm:$0xff]  }
 0x18f   : > { %2283 = vmatprep.subr.bf16.mxu0 %v2517_v58 }
 0x192   : > { %2284 = vmatpush3.bf16.msra.mxu0 %v2379_v27  ;;  %v2419_v27 = vld [vmem:[%s3149_s5 + $0xe0] sm:$0xff]  }
 0x193   : > { %2285 = vmatprep.subr.bf16.mxu0 %v2517_v58 }
 0x196   : > { %2286 = vmatpush3.bf16.msra.mxu0 %v2380_v30 }
 0x197   : > { %2287 = vmatprep.subr.bf16.mxu0 %v2517_v58 }
 0x19a   : > { %2288 = vmatpush3.bf16.msra.mxu0 %v2381_v33  ;;  %v2422_v33 = vld [vmem:[%s3149_s5 + $0xf8] sm:$0xff]  }
 0x19b   : > { %2289 = vmatprep.subr.bf16.mxu0 %v2517_v58 }
 0x19e   : > { %2290 = vmatpush3.bf16.msra.mxu0 %v2382_v37 }
 0x19f   : > { %1493 = vmatprep.subr.bf16.mxu0 %v2385_v39  ;;  %v2429_v39 = vld [vmem:[%s3155_s11 + $0x58] sm:$0xff]  }
 0x1a1   : > { %2292 = vmatmul.mubr.bf16.vlgmr.msra.gmra.mrb[4].mxu0 %v1038_v43  ;;  %v2433_v43 = vld [vmem:[%s3155_s11 + $0x68] sm:$0xff]  }
 0x1a2   : > { %1494 = vmatpush1.bf16.msra.mxu0 %v2383_v42  ;;  %1525 = vmatprep.mubr.bf16.mxu0 %v2519_v47  ;;  %v2432_v42 = vld [vmem:[%s3155_s11 + $0x20] sm:$0xff]  }
 0x1a3   : > { %1495 = vmatprep.subr.bf16.mxu0 %v2388_v44  ;;  %v2010_v44 = vld [vmem:[%s3150_s6] ss:$0 sm:$0xff] }
 0x1a6   : > { %1496 = vmatpush1.bf16.msra.mxu0 %v2386_v46  ;;  %v2434_v46 = vld [vmem:[%s3155_s11 + $0x28] sm:$0xff]  }
 0x1a7   : > { %1497 = vmatprep.subr.bf16.mxu0 %v2391_v48 }
 0x1aa   : > { %1498 = vmatpush1.bf16.msra.mxu0 %v2389_v49 }
 0x1ab   : > { %1499 = vmatprep.subr.bf16.mxu0 %v2394_v50  ;;  %v2435_v50 = vld [vmem:[%s3155_s11 + $0x70] sm:$0xff]  }
 0x1ae   : > { %1500 = vmatpush1.bf16.msra.mxu0 %v2392_v51 }
 0x1af   : > { %1501 = vmatprep.subr.bf16.mxu0 %v2397_v52 }
 0x1b2   : > { %1502 = vmatpush1.bf16.msra.mxu0 %v2395_v53  ;;  %v2436_v53 = vld [vmem:[%s3155_s11 + $0x30] sm:$0xff]  }
 0x1b3   : > { %1503 = vmatprep.subr.bf16.mxu0 %v2400_v54  ;;  %v2437_v54 = vld [vmem:[%s3155_s11 + $0x78] sm:$0xff]  }
 0x1b6   : > { %1504 = vmatpush1.bf16.msra.mxu0 %v2398_v56  ;;  %v2079_v56 = vld [vmem:[%s3150_s6 + $0x2] ss:$0 sm:$0xff] }
 0x1b7   : > { %1505 = vmatprep.subr.bf16.mxu0 %v2403_v57 }
 0x1ba   : > { %1506 = vmatpush1.bf16.msra.mxu0 %v2401_v61 }
 0x1bb   : > { %1507 = vmatprep.subr.bf16.mxu0 %v2406_v62 }
 0x1be   : > { %1508 = vmatpush1.bf16.msra.mxu0 %v2404_v34  ;;  %v1404_v34 = vshrl.u32 %v1403_v0, 7 }
 0x1c0   : > { %v1405_v8 = vsub.s32 0, %v1404_v34 }
 0x1c1   : > { %1526 = vmatmul.mubr.bf16.vlgmr.msra.gmra.mrb[8].mxu0 %v1384_v9  ;;  %v1401_v9 = vld [vmem:[%s3154_s10] sm:$0x3] }
 0x206   : > { %v1197_v18 = vpop.xlane.xlu1 %1196 }
 0x207   : > { %v1198_v21 = vmul.f32 0.0078125, %v1197_v18 }
 0x209   : > { %v865_v10 = vpop.xlane.xlu0 %864  ;;  %v1199_v24 = vadd.f32 1e-05, %v1198_v21 }
 0x20a   : > { %v866_v11 = vmul.f32 0.0078125, %v865_v10  ;;  %v1409_v10 = vsub.s32 1, %v1404_v34 }
 0x20c   : > { %v867_v13 = vadd.f32 1e-05, %v866_v11  ;;  %v1406_v11 = vrot.slane %v1401_v9, %v1405_v8 }
 0x20e   : > { %2445 = vrsqrt.f32 %v867_v13  ;;  %v1410_v13 = vrot.slane %v1401_v9, %v1409_v10 }
 0x20f   : > { %2447 = vrsqrt.f32 %v1199_v24 }
 0x218   : > { %v2446_v16 = vpop.eup %2445 }
 0x219   : > { %v869_v17 = vmul.f32 %v2446_v16, %v2835_v14  ;;  %v2417_v14 = vld [vmem:[%s3149_s5 + $0xd0] sm:$0xff]   ;;  %v2448_v28 = vpop.eup %2447 }
 0x21a   : > { %v1201_v30 = vmul.f32 %v2448_v28, %v2825_v4  ;;  %v2423_v4 = vld [vmem:[%s3155_s11 + $0x40] sm:$0xff]  }
 0x21b   : > { %v870_v19 = vmul.f32 %v2832_v12, %v869_v17 }
 0x21c   : > { %v1202_v32 = vmul.f32 %v2832_v12, %v1201_v30  ;;  %v2425_v12 = vld [vmem:[%s3155_s11 + $0x48] sm:$0xff]  }
 0x21d   : > { %v871_v20 = vadd.f32 %v2840_v15, %v870_v19 }
 0x21e   : > { %v1203_v35 = vadd.f32 %v2840_v15, %v1202_v32  ;;  %v2427_v15 = vld [vmem:[%s3155_s11 + $0x50] sm:$0xff]  }
 0x21f   : > { %v872_v23 = vpack.c.bf16 %v871_v20, %v871_v20 }
 0x220   : > { %v1204_v37 = vpack.c.bf16 %v1203_v35, %v1203_v35 }
 0x221   : > { %2272 = vmatmul.mubr.bf16.vlgmr.msra.gmra.mrb[0].mxu1 %v872_v23 }
 0x222   : > { %2296 = vmatpush3.bf16.msra.mxu1 %v2415_v22  ;;  %2311 = vmatprep.mubr.msk.bf16.mxu1 %vm2518_vm0, %v2517_v58 }
 0x223   : > { %2297 = vmatprep.subr.bf16.mxu1 %v2517_v58 }
 0x226   : > { %2298 = vmatpush3.bf16.msra.mxu1 %v2416_v25 }
 0x227   : > { %2299 = vmatprep.subr.bf16.mxu1 %v2517_v58 }
 0x22a   : > { %2300 = vmatpush3.bf16.msra.mxu1 %v2417_v14 }
 0x22b   : > { %2301 = vmatprep.subr.bf16.mxu1 %v2517_v58 }
 0x22e   : > { %2302 = vmatpush3.bf16.msra.mxu1 %v2418_v26 }
 0x22f   : > { %2303 = vmatprep.subr.bf16.mxu1 %v2517_v58 }
 0x232   : > { %2304 = vmatpush3.bf16.msra.mxu1 %v2419_v27 }
 0x233   : > { %2305 = vmatprep.subr.bf16.mxu1 %v2517_v58 }
 0x236   : > { %2306 = vmatpush3.bf16.msra.mxu1 %v2420_v29 }
 0x237   : > { %2307 = vmatprep.subr.bf16.mxu1 %v2517_v58 }
 0x23a   : > { %2308 = vmatpush3.bf16.msra.mxu1 %v2421_v31 }
 0x23b   : > { %2309 = vmatprep.subr.bf16.mxu1 %v2517_v58  ;;  %v2426_v58 = vld [vmem:[%s3155_s11 + $0x8] sm:$0xff]  }
 0x23e   : > { %2310 = vmatpush3.bf16.msra.mxu1 %v2422_v33 }
 0x23f   : > { %2213 = vmatprep.subr.bf16.mxu1 %v2423_v4 }
 0x241   : > { %2312 = vmatmul.mubr.bf16.vlgmr.msra.gmra.mrb[4].mxu1 %v1204_v37 }
 0x242   : > { %2214 = vmatpush3.bf16.msra.mxu1 %v2424_v36 }
 0x243   : > { %2215 = vmatprep.subr.bf16.mxu1 %v2425_v12 }
 0x246   : > { %2216 = vmatpush3.bf16.msra.mxu1 %v2426_v58 }
 0x247   : > { %2217 = vmatprep.subr.bf16.mxu1 %v2427_v15 }
 0x24a   : > { %2218 = vmatpush3.bf16.msra.mxu1 %v2428_v38 }
 0x24b   : > { %2219 = vmatprep.subr.bf16.mxu1 %v2429_v39 }
 0x24e   : > { %2220 = vmatpush3.bf16.msra.mxu1 %v2430_v40 }
 0x24f   : > { %2221 = vmatprep.subr.bf16.mxu1 %v2431_v41  ;;  %v2043_v41 = vld [vmem:[%s3150_s6 + $0x1] ss:$0 sm:$0xff] }
 0x252   : > { %2222 = vmatpush3.bf16.msra.mxu1 %v2432_v42 }
 0x253   : > { %2223 = vmatprep.subr.bf16.mxu1 %v2433_v43 }
 0x254   : > { %v816_v45 = vpop.f32.mrb[0].mxu0 }
 0x255   : > { %v817_v47 = vadd.f32 %v2010_v44, %v816_v45  ;;  %v2253_v48 = vpop.f32.mrb[1].mxu0 }
 0x256   : > { %v819_v49 = vpop.f32.mrb[2].mxu0  ;;  %2224 = vmatpush3.bf16.msra.mxu1 %v2434_v46  ;;  %v2115_v48 = vld [vmem:[%s3150_s6 + $0x3] ss:$0 sm:$0xff] }
 0x257   : > { %v822_v51 = vpack.c.bf16 %v817_v47, %v817_v47  ;;  %v2254_v52 = vpop.f32.mrb[3].mxu0  ;;  %2225 = vmatprep.subr.bf16.mxu1 %v2435_v50 }
 0x259   : > { %824 = vst.msk [vmem:[%s3043_s30] sm:$0xf] %vm823_vm1, %v822_v51  ;;  %832 = vrot.lane.b32.xlu1 %v822_v51, %s2520_s27  ;;  %828 = vrot.lane.b32.xlu0 %v822_v51, %s2521_s26 }
 0x25a   : > { %2226 = vmatpush3.bf16.msra.mxu1 %v2436_v53  ;;  %v2151_v53 = vld [vmem:[%s3156_s12] ss:$0 sm:$0xff] }
 0x25b   : > { %2227 = vmatprep.subr.bf16.mxu1 %v2437_v54 }
 0x25e   : > { %2228 = vmatpush3.bf16.msra.mxu1 %v2438_v55 }
 0x274   : > { %v1146_v57 = vpop.f32.mrb[4].mxu0 }
 0x275   : > { %v1147_v59 = vadd.f32 %v2079_v56, %v1146_v57  ;;  %v2293_v60 = vpop.f32.mrb[5].mxu0 }
 0x276   : > { %v1149_v61 = vpop.f32.mrb[6].mxu0 }
 0x277   : > { %v1152_v62 = vpack.c.bf16 %v1147_v59, %v1147_v59  ;;  %v2294_v63 = vpop.f32.mrb[7].mxu0 }
 0x279   : > { %2088 = vst.msk [vmem:[%s3043_s30 + $0x8] sm:$0xf] %vm823_vm1, %v1152_v62  ;;  %1158 = vrot.lane.b32.xlu0 %v1152_v62, %s2521_s26 }
 0x294   : > { %v1527_v16 = vpop.f32.mrb[8].mxu0 }
 0x295   : > { %v1528_v17 = vadd.f32 %v1527_v16, %v1406_v11  ;;  %v1529_v18 = vpop.f32.mrb[9].mxu0 }
 0x296   : > { %v1530_v19 = vadd.f32 %v1529_v18, %v1410_v13  ;;  %v1531_v20 = vpop.f32.mrb[10].mxu0 }
 0x297   : > { %v1536_v21 = vmul.f32 0.044715, %v1528_v17  ;;  %v1532_v22 = vpop.f32.mrb[11].mxu0  ;;  %v1534_v33 = vmul.f32 0.5, %v1528_v17 }
 0x298   : > { %v1537_v23 = vmul.f32 0.044715, %v1530_v19  ;;  %v1535_v4 = vmul.f32 0.5, %v1530_v19 }
 0x299   : > { %v1538_v24 = vmul.f32 %v1536_v21, %v1528_v17 }
 0x29a   : > { %v1539_v25 = vmul.f32 %v1537_v23, %v1530_v19 }
 0x29b   : > { %v1540_v14 = vmul.f32 %v1538_v24, %v1528_v17 }
 0x29c   : > { %v1541_v26 = vmul.f32 %v1539_v25, %v1530_v19 }
 0x29d   : > { %v1542_v27 = vadd.f32 %v1540_v14, %v1528_v17 }
 0x29e   : > { %v1543_v28 = vadd.f32 %v1541_v26, %v1530_v19 }
 0x29f   : > { %v1544_v29 = vmul.f32 0.7978846, %v1542_v27 }
 0x2a0   : > { %v1545_v30 = vmul.f32 0.7978846, %v1543_v28 }
 0x2a1   : > { %2449 = vtanh.f32 %v1544_v29 }
 0x2a2   : > { %2451 = vtanh.f32 %v1545_v30 }
 0x2ab   : > { %v2450_v31 = vpop.eup %2449 }
 0x2ac   : > { %v2452_v32 = vpop.eup %2451  ;;  %v1548_v35 = vadd.f32 1.0, %v2450_v31 }
 0x2ad   : > { %v1549_v36 = vadd.f32 1.0, %v2452_v32 }
 0x2ae   : > { %v1550_v37 = vmul.f32 %v1548_v35, %v1534_v33 }
 0x2af   : > { %v1551_v12 = vmul.f32 %v1549_v36, %v1535_v4 }
 0x2b0   : > { %v1552_v15 = vpack.c.bf16 %v1550_v37, %v1550_v37 }
 0x2b1   : > { %v1553_v58 = vpack.c.bf16 %v1551_v12, %v1551_v12 }
 0x2b3   : > { %1721 = vmatprep.mubr.bf16.mxu1 %v1553_v58 }
 0x2b4   : > { %1722 = vmatmul.mubr.bf16.vlgmr.msra.gmra.mrb[8].mxu1 %v1552_v15 }
 0x2cb   : > { %v833_v38 = vpop.permute.xlu1 %832  ;;  %v829_v39 = vpop.permute.xlu0 %828 }
 0x2cc   : > { %835 = vst.msk [vmem:[%s3074_s19] sm:$0xf] %vm823_vm1, %v833_v38  ;;  %831 = vst.msk [vmem:[%s3080_s24] sm:$0xf] %vm823_vm1, %v829_v39 }
 0x2eb   : > { %v1159_v40 = vpop.permute.xlu0 %1158 }
 0x2ec   : > { %2090 = vst.msk [vmem:[%s3080_s24 + $0x8] sm:$0xf] %vm823_vm1, %v1159_v40 }
 0x2f4   : > { %v980_v42 = vpop.f32.mrb[0].mxu1 }
 0x2f5   : > { %v981_v43 = vadd.f32 %v2043_v41, %v980_v42  ;;  %v2273_v44 = vpop.f32.mrb[1].mxu1 }
 0x2f6   : > { %v983_v45 = vpop.f32.mrb[2].mxu1 }
 0x2f7   : > { %v986_v46 = vpack.c.bf16 %v981_v43, %v981_v43  ;;  %v2274_v47 = vpop.f32.mrb[3].mxu1 }
 0x2f9   : > { %2052 = vst.msk [vmem:[%s3043_s30 + $0x4] sm:$0xf] %vm823_vm1, %v986_v46  ;;  %992 = vrot.lane.b32.xlu1 %v986_v46, %s2521_s26 }
 0x2fd   : > { %997 = vrot.lane.b32.xlu1 %v986_v46, %s2520_s27 }
 0x301   : > { %1163 = vrot.lane.b32.xlu1 %v1152_v62, %s2520_s27 }
 0x314   : > { %v1312_v49 = vpop.f32.mrb[4].mxu1 }
 0x315   : > { %v1313_v50 = vadd.f32 %v2115_v48, %v1312_v49  ;;  %v2313_v1 = vpop.f32.mrb[5].mxu1 }
 0x316   : > { %v1315_v51 = vpop.f32.mrb[6].mxu1 }
 0x317   : > { %v1318_v2 = vpack.c.bf16 %v1313_v50, %v1313_v50  ;;  %v2314_v52 = vpop.f32.mrb[7].mxu1 }
 0x319   : > { %2124 = vst.msk [vmem:[%s3043_s30 + $0xc] sm:$0xf] %vm823_vm1, %v1318_v2  ;;  %1329 = vrot.lane.b32.xlu1 %v1318_v2, %s2520_s27  ;;  %1324 = vrot.lane.b32.xlu0 %v1318_v2, %s2521_s26 }
 0x36b   : > { %v993_v3 = vpop.permute.xlu1 %992 }
 0x36c   : > { %2054 = vst.msk [vmem:[%s3080_s24 + $0x4] sm:$0xf] %vm823_vm1, %v993_v3 }
 0x36f   : > { %v998_v5 = vpop.permute.xlu1 %997 }
 0x370   : > { %2055 = vst.msk [vmem:[%s3074_s19 + $0x4] sm:$0xf] %vm823_vm1, %v998_v5 }
 0x373   : > { %v1164_v6 = vpop.permute.xlu1 %1163 }
 0x374   : > { %2091 = vst.msk [vmem:[%s3074_s19 + $0x8] sm:$0xf] %vm823_vm1, %v1164_v6 }
 0x387   : > { %v2229_v7 = vpop.f32.mrb[8].mxu1 }
 0x388   : > { %v2230_v54 = vpop.f32.mrb[9].mxu1 }
 0x389   : > { %v2231_v55 = vadd.f32 %v2230_v54, %v2229_v7  ;;  %v2232_v56 = vpop.f32.mrb[10].mxu1 }
 0x38a   : > { %v2233_v57 = vpop.f32.mrb[11].mxu1 }
 0x38b   : > { %v1724_v59 = vadd.f32 %v2231_v55, %v2151_v53  ;;  %v1330_v60 = vpop.permute.xlu1 %1329  ;;  %v1325_v61 = vpop.permute.xlu0 %1324 }
 0x38c   : > { %2127 = vst.msk [vmem:[%s3074_s19 + $0xc] sm:$0xf] %vm823_vm1, %v1330_v60  ;;  %2126 = vst.msk [vmem:[%s3080_s24 + $0xc] sm:$0xf] %vm823_vm1, %v1325_v61 }
 0x38d   : > { %1729 = vst [vmem:[%s3100_s20 + $0x50] sm:$0xff] %v1724_v59 }
 0x38e PF: > { %s29_s23 = sadd.s32 1, %s2513_s23   ;;  %s3176_s21 = sld [smem:[#allocation8_spill]] }
 0x38f   : > { %p26_p4 = scmp.ge.s32.totalorder %s29_s23, 4   ;;  %s3177_s22 = sld [smem:[#allocation9_spill]] }
 0x391   :  { %28 = sbr.rel (!%p26_p4) target bundleno = 6 (0x6), region = 162 }
 0x398   :  { %1825 = vsyncpa [#allocation3], 1 }
 0x399   :  { %1827 = vsyncpa [#allocation3 + $0x1], 1 }
 0x39a   :  { %1828 = vsyncpa [#allocation5], 1 }

</bundles_post_ra>
